<compile_context>
chip_gen: v7x
topology: tpu7x:2x2x1
jax: 0.10.0
libtpu: 0.0.40
codegen_flags: <defaults>
</compile_context>

<pallas_src>
import functools
import math

import jax
import jax.numpy as jnp
from jax import lax
from jax.experimental import pallas as pl
from jax.experimental.pallas import tpu as pltpu

BF16 = jnp.bfloat16
F32 = jnp.float32


# ----------------------------------------------------------------------------------
# small matmul helpers: bf16 MXU operands, f32 accumulation
# ----------------------------------------------------------------------------------
def _mm(a, b):
    """(m,k) @ (k,n) with bf16 operands and f32 accumulation."""
    return jnp.dot(a.astype(BF16), b.astype(BF16), preferred_element_type=F32)


def _mm_nt(a, b):
    """a @ b.T (contract last dims of both) with bf16 operands, f32 accumulation."""
    return lax.dot_general(a.astype(BF16), b.astype(BF16),
                           (((1,), (1,)), ((), ())), preferred_element_type=F32)


# ----------------------------------------------------------------------------------
# Pallas kernel: chunked DPLR RWKV-7 recurrence + group-norm + bonus + gate
# ----------------------------------------------------------------------------------
def _attn_ln_kernel(r_ref, k_ref, v_ref, a_ref, b_ref, g_ref, gi_ref, ge_ref,
                    lnw_ref, lnb_ref, fa_ref, o_ref, state_ref, *, n_head, eps):
    # r/k/v/a(=kk)/b/g : (L, C) bf16 chunk tiles (channels on lanes)
    # gi / ge          : (L, C) f32 inclusive / exclusive within-chunk cum log-decay
    # lnw/lnb/fa       : (1, C) f32 per-channel params
    # o_ref            : (L, C) bf16 output chunk
    # state_ref        : (H, Ch, Ch) f32 per-head state Z (rows = key ch, cols = value ch),
    #                    carried across the chunk grid axis.
    L, C = r_ref.shape
    H = n_head
    Ch = C // H

    @pl.when(pl.program_id(1) == 0)
    def _init_state():
        state_ref[...] = jnp.zeros_like(state_ref)

    r = r_ref[...].astype(F32)
    k = k_ref[...].astype(F32)
    v = v_ref[...].astype(F32)
    a = a_ref[...].astype(F32)
    b = b_ref[...].astype(F32)
    g = g_ref[...].astype(F32)
    gi = gi_ref[...]
    ge = ge_ref[...]

    # decay factors, computed once per (L, C) tile and shared by every head.
    # (chunk length is kept <= 128 in the wrapper so exp(-gi) stays in range.)
    di = jnp.exp(gi)                        # exp(g_t)
    de = jnp.exp(ge)                        # exp(g_{t-1})
    dinv = jnp.exp(-gi)                     # exp(-g_t)
    dlast = jnp.exp(gi[L - 1:L, :] - gi)    # exp(g_L - g_t) <= 1

    lnw = lnw_ref[...]
    lnb = lnb_ref[...]
    fa = fa_ref[...]

    # triangular masks / identities built from 2-D iota (no jnp.eye)
    row = lax.broadcasted_iota(jnp.int32, (L, L), 0)
    col = lax.broadcasted_iota(jnp.int32, (L, L), 1)
    strict = col < row
    incl = col <= row
    eye_l = jnp.where(row == col, 1.0, 0.0).astype(F32)
    row_c = lax.broadcasted_iota(jnp.int32, (Ch, Ch), 0)
    col_c = lax.broadcasted_iota(jnp.int32, (Ch, Ch), 1)
    eye_c = jnp.where(row_c == col_c, 1.0, 0.0).astype(F32)

    # number of doubling steps so (I+M)(I+M^2)(I+M^4)... covers M^{L-1}
    n_double = max(int(math.ceil(math.log2(L))) - 1, 0) if L > 1 else 0

    outs = []
    for h in range(H):                       # H is small & static
        cs = slice(h * Ch, (h + 1) * Ch)
        qh, kh, vh, ah, bh, gh = r[:, cs], k[:, cs], v[:, cs], a[:, cs], b[:, cs], g[:, cs]

        qg = qh * di[:, cs]                  # q_t * exp(g_t)
        ag = ah * de[:, cs]                  # a_t * exp(g_{t-1})
        binv = bh * dinv[:, cs]              # b_s * exp(-g_s)
        kinv = kh * dinv[:, cs]              # k_s * exp(-g_s)
        bg = bh * dlast[:, cs]               # b_s * exp(g_L - g_s)
        kg = kh * dlast[:, cs]               # k_s * exp(g_L - g_s)

        z0 = state_ref[h]                    # (Ch, Ch) f32

        # within-chunk (L, L) interaction matrices (bf16 MXU, f32 accumulate)
        m_ab = jnp.where(strict, _mm_nt(ag, binv), 0.0)   # a_t . b_s . exp(g_{t-1}-g_s)
        m_ak = jnp.where(strict, _mm_nt(ag, kinv), 0.0)   # a_t . k_s . exp(g_{t-1}-g_s)
        m_qb = jnp.where(incl, _mm_nt(qg, binv), 0.0)     # q_t . b_s . exp(g_t-g_s)
        m_qk = jnp.where(incl, _mm_nt(qg, kinv), 0.0)     # q_t . k_s . exp(g_t-g_s)

        # UT transform: (I - m_ab)^-1, m_ab strictly lower => nilpotent, so the
        # Neumann series terminates; ceil(log2(L)) small (L,L) matmuls.
        tinv = eye_l + m_ab
        p = m_ab
        for _ in range(n_double):
            p = _mm(p, p)
            tinv = tinv + _mm(tinv, p)

        # h_t = a_t^T Z_{t-1} for the whole chunk at once
        hmat = _mm(tinv, _mm(ag, z0) + _mm(m_ak, vh))               # (L, Ch)

        # y_t = q_t^T Z_t for the whole chunk at once
        y = _mm(qg, z0) + _mm(m_qb, hmat) + _mm(m_qk, vh)           # (L, Ch)

        # carry the state: Z_L = diag(exp(g_L)) Z_0 + Bg^T H + Kg^T V   (kept f32)
        d_tot = jnp.sum(eye_c * di[L - 1:L, cs], axis=1, keepdims=True)   # (Ch, 1)
        z_new = d_tot * z0 + _mm(bg.T, hmat) + _mm(kg.T, vh)
        state_ref[h] = z_new

        # fused epilogue on the register tile: GroupNorm (biased var) + bonus + gate
        mean = jnp.mean(y, axis=-1, keepdims=True)
        var = jnp.mean(jnp.square(y - mean), axis=-1, keepdims=True)
        gn = (y - mean) * lax.rsqrt(var + eps) * lnw[:, cs] + lnb[:, cs]
        bonus = jnp.sum(qh * kh * fa[:, cs], axis=-1, keepdims=True) * vh
        outs.append((gn + bonus) * gh)

    # one dense, lane-contiguous (L, C) bf16 store per chunk
    o_ref[...] = jnp.concatenate(outs, axis=-1).astype(o_ref.dtype)


def attn_ln_pallas(r, w, k, v, kk, b, g, ln_w, ln_b, faaaa, n_head,
                   eps=0.00064, chunk=64):
    """Fused chunked RWKV-7 attention + group-norm for (B, T, C). Returns bf16."""
    B, T, C = r.shape
    H = n_head
    Ch = C // H

    # T-chunking: full sequence if short, otherwise `chunk` rows (multiple of 8;
    # keep <= 128 so within-chunk exp(-cumulative log-decay) stays in f32/bf16 range).
    if T <= chunk:
        L, Tp = T, T
    else:
        L = chunk
        Tp = ((T + L - 1) // L) * L
    nt = Tp // L

    def pad_t(x):
        return x if Tp == T else jnp.pad(x, ((0, 0), (0, Tp - T), (0, 0)))

    # bf16 at the kernel boundary for the data streams (matches the torch
    # .bfloat16() casts); decay stays f32 (bf16-rounding decays ~1.0 loses precision).
    streams = [pad_t(t.astype(BF16)) for t in (r, k, v, kk, b, g)]

    # per-chunk cumulative log-decay, precomputed outside the kernel (cheap XLA).
    lw = pad_t(-jnp.exp(w.astype(F32)))              # log decay, <= 0 (pads are 0 => decay 1)
    lw_c = lw.reshape(B, nt, L, C)
    gi = jnp.cumsum(lw_c, axis=2)                    # inclusive within-chunk cumsum
    ge = gi - lw_c                                   # exclusive
    gi = gi.reshape(B, Tp, C)
    ge = ge.reshape(B, Tp, C)

    lnw = ln_w.reshape(1, C).astype(F32)
    lnb = ln_b.reshape(1, C).astype(F32)
    fa = faaaa.reshape(1, C).astype(F32)

    row_spec = pl.BlockSpec((None, L, C), lambda bb, tt: (bb, tt, 0))
    par_spec = pl.BlockSpec((1, C), lambda bb, tt: (0, 0))

    kernel = functools.partial(_attn_ln_kernel, n_head=H, eps=eps)
    out = pl.pallas_call(
        kernel,
        out_shape=jax.ShapeDtypeStruct((B, Tp, C), BF16),
        grid=(B, nt),
        in_specs=[row_spec] * 8 + [par_spec] * 3,
        out_specs=row_spec,
        scratch_shapes=[pltpu.VMEM((H, Ch, Ch), F32)],   # carried per-head state
        compiler_params=pltpu.CompilerParams(
            dimension_semantics=("parallel", "arbitrary"),
            vmem_limit_bytes=64 * 1024 * 1024),
    )(*streams, gi, ge, lnw, lnb, fa)
    return out[:, :T] if Tp != T else out


# ----------------------------------------------------------------------------------
# pure-JAX sequential reference of the same fused op (used for the self-check)
# ----------------------------------------------------------------------------------
def attn_ln_ref(r, w, k, v, kk, b, g, ln_w, ln_b, faaaa, n_head, eps=0.00064):
    B, T, C = r.shape
    H = n_head
    Ch = C // H

    def heads(x):
        return x.astype(BF16).astype(F32).reshape(B, T, H, Ch)

    q, kh, vh, ah, bh, gh = map(heads, (r, k, v, kk, b, g))
    d = jnp.exp(-jnp.exp(w.astype(F32))).reshape(B, T, H, Ch)

    def step(s, xs):
        dt, at, bt, kt, vt, qt = xs
        sa = jnp.einsum('bhij,bhj->bhi', s, at)
        s = (s * dt[:, :, None, :] + sa[..., None] * bt[:, :, None, :]
             + vt[..., None] * kt[:, :, None, :])
        yt = jnp.einsum('bhij,bhj->bhi', s, qt)
        return s, yt

    xs = tuple(jnp.moveaxis(t, 1, 0) for t in (d, ah, bh, kh, vh, q))
    s0 = jnp.zeros((B, H, Ch, Ch), F32)
    _, ys = lax.scan(step, s0, xs)
    y = jnp.moveaxis(ys, 0, 1)                               # (B, T, H, Ch)

    mean = jnp.mean(y, axis=-1, keepdims=True)
    var = jnp.mean(jnp.square(y - mean), axis=-1, keepdims=True)
    gn = (y - mean) * lax.rsqrt(var + eps)
    gn = gn * ln_w.reshape(H, Ch) + ln_b.reshape(H, Ch)
    bonus = jnp.sum(q * kh * faaaa.reshape(H, Ch), axis=-1, keepdims=True) * vh
    return ((gn + bonus) * gh).reshape(B, T, C).astype(BF16)


# ----------------------------------------------------------------------------------
# TimeMixer forward (reference-branch semantics of the torch module)
# ----------------------------------------------------------------------------------
def time_mixer_forward(params, x, n_head, attn_impl='pallas'):
    B, T, C = x.shape
    H = n_head
    x = x.astype(F32)

    # ---- ddlerp (token-shift data-dependent lerp) ----
    x_prev = jnp.pad(x, ((0, 0), (1, 0), (0, 0)))[:, :T]      # F.pad(x, (0,0,1,-1))
    xx = x_prev - x
    xxx = x + xx * params['time_maa_x']
    t1 = jnp.tanh(xxx @ params['time_maa_w1'].T)              # (B, T, 128)
    t1 = t1.reshape(B * T, 4, 32).transpose(1, 0, 2)          # (4, BT, 32)
    t2 = jnp.einsum('gnd,gcd->gnc', t1, params['time_maa_w2'])
    t2 = t2.reshape(4, B, T, C)
    mixed = x[None] + xx[None] * (t2 + params['time_maa'])
    xrg, xwa, xk, xv = [mixed[i].astype(BF16) for i in range(4)]

    # ---- projections (bf16, like the torch forward) ----
    def mm(a, wmat):                                          # a @ wmat.mT
        return jnp.dot(a, wmat.astype(BF16).T)

    r = mm(xrg, params['Wr'])
    g1 = mm(xrg, params['gate_w1'])
    k = mm(xk, params['Wk'])
    kkmk = mm(xk, jnp.concatenate([params['time_kkk_w1'], params['mk_w1']], axis=0))
    kk1, mk1 = kkmk[..., :16], kkmk[..., 16:]
    v = mm(xv, params['Wv'])
    wam = mm(xwa, jnp.concatenate([params['time_decay_w1'], params['time_aaa_w1'],
                                   params['ma_w1']], axis=0))
    w1, a1, ma1 = wam[..., :64], wam[..., 64:80], wam[..., 80:96]
    g = mm(jnp.tanh(g1), params['gate_w2'])                   # gate_w2 stored (C, 128)
    w2 = mm(jnp.tanh(w1), params['time_decay_w2'])            # time_decay_w2 stored (C, 64)

    # ---- expand loras (fp32) ----
    w = -jax.nn.softplus(-(params['time_decay'] + w2.astype(F32))) - 0.5
    kk = k.astype(F32) + jnp.tanh(kk1.astype(F32)) @ params['time_kkk_w2'].T
    kk_h = kk.reshape(B, T, H, C // H)
    kk_h = kk_h / jnp.maximum(jnp.linalg.norm(kk_h, axis=-1, keepdims=True), 1e-12)
    kk = kk_h.reshape(B, T, C)
    a = jax.nn.sigmoid(params['time_aaaaa'] + a1.astype(F32) @ params['time_aaa_w2'].T)
    ma = jax.nn.sigmoid(params['time_misc_a'] + ma1.astype(F32) @ params['ma_w2'].T)
    kf = k.astype(F32)
    kf = kf * ma + kf * a * (1.0 - ma)
    mk = jax.nn.sigmoid(params['time_misc_k'] + mk1.astype(F32) @ params['mk_w2'].T)
    kf = kf * jnp.exp(w * mk)
    b = -kk * a

    # ---- fused attention + group-norm + bonus + gate ----
    attn_fn = attn_ln_pallas if attn_impl == 'pallas' else attn_ln_ref
    attn_out = attn_fn(r, w, kf, v, kk, b, g,
                       params['ln_w'], params['ln_b'], params['time_faaaa'], H)

    # ---- output projection ----
    return jnp.dot(attn_out, params['Wo'].astype(BF16).T)


# ----------------------------------------------------------------------------------
# deterministic synthetic parameter init (shapes follow the torch __init__)
# ----------------------------------------------------------------------------------
def init_params(key, n_embd, n_head, n_layer, layer_id):
    C = n_embd
    ratio_0_to_1 = layer_id / max(n_layer - 1, 1)
    ratio_1_to_almost0 = 1.0 - layer_id / n_layer
    ddd = jnp.arange(C, dtype=F32) / C

    keys = iter(jax.random.split(key, 24))

    def rnd(shape, scale):
        return scale * jax.random.normal(next(keys), shape, dtype=F32)

    def unif(shape, scale, fan_in):
        lim = scale / (fan_in ** 0.5)
        return jax.random.uniform(next(keys), shape, dtype=F32, minval=-lim, maxval=lim)

    p = {}
    p['time_maa_x'] = 1.0 - jnp.power(ddd, 0.6 * ratio_1_to_almost0 ** 0.9)
    maa_rg = 1.0 - jnp.power(ddd, 0.2 * ratio_1_to_almost0)
    maa_wa = 1.0 - jnp.power(ddd, 0.9 * ratio_1_to_almost0)
    maa_k = 1.0 - (jnp.power(ddd, 0.9 * ratio_1_to_almost0) + 0.4 * ratio_0_to_1)
    maa_v = 1.0 - (jnp.power(ddd, 0.4 * ratio_1_to_almost0) + 0.6 * ratio_0_to_1)
    p['time_maa'] = jnp.stack([maa_rg, maa_wa, maa_k, maa_v])[:, None, None, :]
    n_idx = jnp.arange(C, dtype=F32)
    decay_speed = -7.0 + 5.0 * (n_idx / (C - 1)) ** (0.85 + 1.0 * ratio_0_to_1 ** 0.5)
    p['time_decay'] = decay_speed + 0.5

    s = 0.1 / (C ** 0.5)
    # NOTE: several tensors below are zero-initialized in the torch module (LoRA w1's,
    # time_faaaa, time_aaaaa, misc); small deterministic random values are used instead
    # so every code path is numerically exercised in this synthetic test.
    p['time_faaaa'] = rnd((C,), 0.1)
    p['time_aaaaa'] = rnd((C,), 0.1)
    p['time_maa_w1'] = rnd((32 * 4, C), s)
    p['time_maa_w2'] = rnd((4, C, 32), s)
    p['time_decay_w1'] = rnd((64, C), s)
    p['time_decay_w2'] = rnd((C, 64), s)
    p['time_aaa_w1'] = rnd((16, C), s)
    p['time_aaa_w2'] = rnd((C, 16), s)
    p['time_kkk_w1'] = rnd((16, C), s)
    p['time_kkk_w2'] = rnd((C, 16), s)
    p['gate_w1'] = rnd((128, C), s)
    p['gate_w2'] = rnd((C, 128), s)
    p['ma_w1'] = rnd((16, C), s)
    p['ma_w2'] = rnd((C, 16), s)
    p['time_misc_a'] = rnd((C,), 0.1)
    p['mk_w1'] = rnd((16, C), s)
    p['mk_w2'] = rnd((C, 16), s)
    p['time_misc_k'] = rnd((C,), 0.1)
    p['Wr'] = unif((C, C), 0.5, C)
    p['Wk'] = unif((C, C), 0.05, C)
    p['Wv'] = unif((C, C), 0.5, C)
    p['Wo'] = unif((C, C), 0.5, C)   # torch init uses scale 0 (all zeros); non-zero here for a non-trivial output
    p['ln_w'] = jnp.ones((C,), F32)
    p['ln_b'] = jnp.zeros((C,), F32)
    return p


if __name__ == "__main__":
    B, T, C, H = 2, 8, 32, 2      # n_embd=32, n_head=2 -> head_size=16
    n_layer, layer_id = 4, 1

    key = jax.random.PRNGKey(0)
    kx, kp = jax.random.split(key)
    params = init_params(kp, C, H, n_layer, layer_id)
    x = jax.random.normal(kx, (B, T, C), dtype=jnp.float32)

    fwd = jax.jit(functools.partial(time_mixer_forward, n_head=H))
    y = fwd(params, x)
    jax.block_until_ready(y)

    assert y.shape == (B, T, C), y.shape
    assert y.dtype == jnp.bfloat16, y.dtype
    yf = y.astype(jnp.float32)
    assert bool(jnp.all(jnp.isfinite(yf)))

    # cross-check the chunked Pallas recurrence against a sequential pure-JAX scan
    fwd_ref = jax.jit(functools.partial(time_mixer_forward, n_head=H, attn_impl='ref'))
    y_ref = fwd_ref(params, x).astype(jnp.float32)
    jax.block_until_ready(y_ref)
    err = float(jnp.max(jnp.abs(yf - y_ref)))
    scale = float(jnp.max(jnp.abs(y_ref)))
    assert err <= 0.1 * scale + 1e-3, (err, scale)

    print("KERNEL_OK")
</pallas_src>

<mosaic_0001>
module attributes {stable_mosaic.version = 11 : i64} {
  func.func @_attn_ln_kernel(%arg0: i32, %arg1: i32, %arg2: memref<1x8x32xbf16, #tpu.memory_space<vmem>>, %arg3: memref<1x8x32xbf16, #tpu.memory_space<vmem>>, %arg4: memref<1x8x32xbf16, #tpu.memory_space<vmem>>, %arg5: memref<1x8x32xbf16, #tpu.memory_space<vmem>>, %arg6: memref<1x8x32xbf16, #tpu.memory_space<vmem>>, %arg7: memref<1x8x32xbf16, #tpu.memory_space<vmem>>, %arg8: memref<1x8x32xf32, #tpu.memory_space<vmem>>, %arg9: memref<1x8x32xf32, #tpu.memory_space<vmem>>, %arg10: memref<1x32xf32, #tpu.memory_space<vmem>>, %arg11: memref<1x32xf32, #tpu.memory_space<vmem>>, %arg12: memref<1x32xf32, #tpu.memory_space<vmem>>, %arg13: memref<1x8x32xbf16, #tpu.memory_space<vmem>>, %arg14: memref<2x16x16xf32, #tpu.memory_space<vmem>>) attributes {dimension_semantics = [#tpu.dimension_semantics<parallel>, #tpu.dimension_semantics<arbitrary>], iteration_bounds = array<i64: 2, 1>, scalar_prefetch = 0 : i64, scratch_operands = 1 : i64, tpu.core_type = #tpu.core_type<tc>, window_params = [{transform_indices = @transform_0, window_bounds = array<i64: 1, 8, 32>}, {transform_indices = @transform_1, window_bounds = array<i64: 1, 8, 32>}, {transform_indices = @transform_2, window_bounds = array<i64: 1, 8, 32>}, {transform_indices = @transform_3, window_bounds = array<i64: 1, 8, 32>}, {transform_indices = @transform_4, window_bounds = array<i64: 1, 8, 32>}, {transform_indices = @transform_5, window_bounds = array<i64: 1, 8, 32>}, {transform_indices = @transform_6, window_bounds = array<i64: 1, 8, 32>}, {transform_indices = @transform_7, window_bounds = array<i64: 1, 8, 32>}, {pipeline_mode = #tpu.pipeline_mode<synchronous>, transform_indices = @transform_8, window_bounds = array<i64: 1, 32>}, {pipeline_mode = #tpu.pipeline_mode<synchronous>, transform_indices = @transform_9, window_bounds = array<i64: 1, 32>}, {pipeline_mode = #tpu.pipeline_mode<synchronous>, transform_indices = @transform_10, window_bounds = array<i64: 1, 32>}, {transform_indices = @transform_11, window_bounds = array<i64: 1, 8, 32>}]} {
    %c0_i32 = arith.constant 0 : i32
    %0 = arith.cmpi eq, %arg1, %c0_i32 : i32
    %1 = arith.extui %0 : i1 to i32
    %c0_i32_0 = arith.constant 0 : i32
    %2 = arith.cmpi ne, %1, %c0_i32_0 : i32
    scf.if %2 {
      %cst_102 = arith.constant 0.000000e+00 : f32
      %316 = vector.broadcast %cst_102 : f32 to vector<2x16x16xf32>
      %c0_103 = arith.constant 0 : index
      %c0_104 = arith.constant 0 : index
      %c0_105 = arith.constant 0 : index
      %317 = vector.load %arg14[%c0_103, %c0_104, %c0_105] : memref<2x16x16xf32, #tpu.memory_space<vmem>>, vector<2x16x16xf32>
      tpu.vector_store %arg14[%c0_103, %c0_104, %c0_105], %316 {strides = array<i32>} : memref<2x16x16xf32, #tpu.memory_space<vmem>>, vector<2x16x16xf32>,
    } else {
    }
    %c0 = arith.constant 0 : index
    %c0_1 = arith.constant 0 : index
    %c0_2 = arith.constant 0 : index
    %3 = vector.load %arg2[%c0, %c0_1, %c0_2] : memref<1x8x32xbf16, #tpu.memory_space<vmem>>, vector<1x8x32xbf16>
    %4 = vector.shape_cast %3 : vector<1x8x32xbf16> to vector<8x32xbf16>
    %5 = arith.extf %4 : vector<8x32xbf16> to vector<8x32xf32>
    %c0_3 = arith.constant 0 : index
    %c0_4 = arith.constant 0 : index
    %c0_5 = arith.constant 0 : index
    %6 = vector.load %arg3[%c0_3, %c0_4, %c0_5] : memref<1x8x32xbf16, #tpu.memory_space<vmem>>, vector<1x8x32xbf16>
    %7 = vector.shape_cast %6 : vector<1x8x32xbf16> to vector<8x32xbf16>
    %8 = arith.extf %7 : vector<8x32xbf16> to vector<8x32xf32>
    %c0_6 = arith.constant 0 : index
    %c0_7 = arith.constant 0 : index
    %c0_8 = arith.constant 0 : index
    %9 = vector.load %arg4[%c0_6, %c0_7, %c0_8] : memref<1x8x32xbf16, #tpu.memory_space<vmem>>, vector<1x8x32xbf16>
    %10 = vector.shape_cast %9 : vector<1x8x32xbf16> to vector<8x32xbf16>
    %11 = arith.extf %10 : vector<8x32xbf16> to vector<8x32xf32>
    %c0_9 = arith.constant 0 : index
    %c0_10 = arith.constant 0 : index
    %c0_11 = arith.constant 0 : index
    %12 = vector.load %arg5[%c0_9, %c0_10, %c0_11] : memref<1x8x32xbf16, #tpu.memory_space<vmem>>, vector<1x8x32xbf16>
    %13 = vector.shape_cast %12 : vector<1x8x32xbf16> to vector<8x32xbf16>
    %14 = arith.extf %13 : vector<8x32xbf16> to vector<8x32xf32>
    %c0_12 = arith.constant 0 : index
    %c0_13 = arith.constant 0 : index
    %c0_14 = arith.constant 0 : index
    %15 = vector.load %arg6[%c0_12, %c0_13, %c0_14] : memref<1x8x32xbf16, #tpu.memory_space<vmem>>, vector<1x8x32xbf16>
    %16 = vector.shape_cast %15 : vector<1x8x32xbf16> to vector<8x32xbf16>
    %17 = arith.extf %16 : vector<8x32xbf16> to vector<8x32xf32>
    %c0_15 = arith.constant 0 : index
    %c0_16 = arith.constant 0 : index
    %c0_17 = arith.constant 0 : index
    %18 = vector.load %arg7[%c0_15, %c0_16, %c0_17] : memref<1x8x32xbf16, #tpu.memory_space<vmem>>, vector<1x8x32xbf16>
    %19 = vector.shape_cast %18 : vector<1x8x32xbf16> to vector<8x32xbf16>
    %20 = arith.extf %19 : vector<8x32xbf16> to vector<8x32xf32>
    %c0_18 = arith.constant 0 : index
    %c0_19 = arith.constant 0 : index
    %c0_20 = arith.constant 0 : index
    %21 = vector.load %arg8[%c0_18, %c0_19, %c0_20] : memref<1x8x32xf32, #tpu.memory_space<vmem>>, vector<1x8x32xf32>
    %22 = vector.shape_cast %21 : vector<1x8x32xf32> to vector<8x32xf32>
    %c0_21 = arith.constant 0 : index
    %c0_22 = arith.constant 0 : index
    %c0_23 = arith.constant 0 : index
    %23 = vector.load %arg9[%c0_21, %c0_22, %c0_23] : memref<1x8x32xf32, #tpu.memory_space<vmem>>, vector<1x8x32xf32>
    %24 = vector.shape_cast %23 : vector<1x8x32xf32> to vector<8x32xf32>
    %25 = math.exp %22 : vector<8x32xf32>
    %26 = math.exp %24 : vector<8x32xf32>
    %cst = arith.constant 0.000000e+00 : f32
    %27 = vector.broadcast %cst : f32 to vector<8x32xf32>
    %28 = arith.subf %27, %22 : vector<8x32xf32>
    %29 = math.exp %28 : vector<8x32xf32>
    %30 = vector.extract_strided_slice %22 {offsets = [7, 0], sizes = [1, 32], strides = [1, 1]} : vector<8x32xf32> to vector<1x32xf32>
    %31 = vector.broadcast %30 : vector<1x32xf32> to vector<8x32xf32>
    %32 = arith.subf %31, %22 : vector<8x32xf32>
    %33 = math.exp %32 : vector<8x32xf32>
    %c0_24 = arith.constant 0 : index
    %c0_25 = arith.constant 0 : index
    %34 = vector.load %arg10[%c0_24, %c0_25] : memref<1x32xf32, #tpu.memory_space<vmem>>, vector<1x32xf32>
    %c0_26 = arith.constant 0 : index
    %c0_27 = arith.constant 0 : index
    %35 = vector.load %arg11[%c0_26, %c0_27] : memref<1x32xf32, #tpu.memory_space<vmem>>, vector<1x32xf32>
    %c0_28 = arith.constant 0 : index
    %c0_29 = arith.constant 0 : index
    %36 = vector.load %arg12[%c0_28, %c0_29] : memref<1x32xf32, #tpu.memory_space<vmem>>, vector<1x32xf32>
    %37 = tpu.iota {dimensions = array<i32: 0>} : vector<8x8xi32>
    %38 = tpu.iota {dimensions = array<i32: 1>} : vector<8x8xi32>
    %39 = arith.cmpi slt, %38, %37 : vector<8x8xi32>
    %40 = arith.cmpi sle, %38, %37 : vector<8x8xi32>
    %41 = arith.cmpi eq, %37, %38 : vector<8x8xi32>
    %cst_30 = arith.constant 1.000000e+00 : f32
    %cst_31 = arith.constant 0.000000e+00 : f32
    %42 = vector.broadcast %cst_30 : f32 to vector<8x8xf32>
    %43 = vector.broadcast %cst_31 : f32 to vector<8x8xf32>
    %44 = arith.select %41, %42, %43 : vector<8x8xi1>, vector<8x8xf32>
    %45 = tpu.iota {dimensions = array<i32: 0>} : vector<16x16xi32>
    %46 = tpu.iota {dimensions = array<i32: 1>} : vector<16x16xi32>
    %47 = arith.cmpi eq, %45, %46 : vector<16x16xi32>
    %cst_32 = arith.constant 1.000000e+00 : f32
    %cst_33 = arith.constant 0.000000e+00 : f32
    %48 = vector.broadcast %cst_32 : f32 to vector<16x16xf32>
    %49 = vector.broadcast %cst_33 : f32 to vector<16x16xf32>
    %50 = arith.select %47, %48, %49 : vector<16x16xi1>, vector<16x16xf32>
    %51 = vector.extract_strided_slice %5 {offsets = [0, 0], sizes = [8, 16], strides = [1, 1]} : vector<8x32xf32> to vector<8x16xf32>
    %52 = vector.extract_strided_slice %8 {offsets = [0, 0], sizes = [8, 16], strides = [1, 1]} : vector<8x32xf32> to vector<8x16xf32>
    %53 = vector.extract_strided_slice %11 {offsets = [0, 0], sizes = [8, 16], strides = [1, 1]} : vector<8x32xf32> to vector<8x16xf32>
    %54 = vector.extract_strided_slice %14 {offsets = [0, 0], sizes = [8, 16], strides = [1, 1]} : vector<8x32xf32> to vector<8x16xf32>
    %55 = vector.extract_strided_slice %17 {offsets = [0, 0], sizes = [8, 16], strides = [1, 1]} : vector<8x32xf32> to vector<8x16xf32>
    %56 = vector.extract_strided_slice %20 {offsets = [0, 0], sizes = [8, 16], strides = [1, 1]} : vector<8x32xf32> to vector<8x16xf32>
    %57 = vector.extract_strided_slice %25 {offsets = [0, 0], sizes = [8, 16], strides = [1, 1]} : vector<8x32xf32> to vector<8x16xf32>
    %58 = arith.mulf %51, %57 : vector<8x16xf32>
    %59 = vector.extract_strided_slice %26 {offsets = [0, 0], sizes = [8, 16], strides = [1, 1]} : vector<8x32xf32> to vector<8x16xf32>
    %60 = arith.mulf %54, %59 : vector<8x16xf32>
    %61 = vector.extract_strided_slice %29 {offsets = [0, 0], sizes = [8, 16], strides = [1, 1]} : vector<8x32xf32> to vector<8x16xf32>
    %62 = arith.mulf %55, %61 : vector<8x16xf32>
    %63 = vector.extract_strided_slice %29 {offsets = [0, 0], sizes = [8, 16], strides = [1, 1]} : vector<8x32xf32> to vector<8x16xf32>
    %64 = arith.mulf %52, %63 : vector<8x16xf32>
    %65 = vector.extract_strided_slice %33 {offsets = [0, 0], sizes = [8, 16], strides = [1, 1]} : vector<8x32xf32> to vector<8x16xf32>
    %66 = arith.mulf %55, %65 : vector<8x16xf32>
    %67 = vector.extract_strided_slice %33 {offsets = [0, 0], sizes = [8, 16], strides = [1, 1]} : vector<8x32xf32> to vector<8x16xf32>
    %68 = arith.mulf %52, %67 : vector<8x16xf32>
    %c0_34 = arith.constant 0 : index
    %c0_35 = arith.constant 0 : index
    %c0_36 = arith.constant 0 : index
    %69 = vector.load %arg14[%c0_34, %c0_35, %c0_36] : memref<2x16x16xf32, #tpu.memory_space<vmem>>, vector<1x16x16xf32>
    %70 = vector.shape_cast %69 : vector<1x16x16xf32> to vector<16x16xf32>
    %71 = arith.truncf %60 : vector<8x16xf32> to vector<8x16xbf16>
    %72 = arith.truncf %62 : vector<8x16xf32> to vector<8x16xbf16>
    %cst_37 = arith.constant dense<0.000000e+00> : vector<8x8xf32>
    %73 = tpu.matmul %71, %72, %cst_37 {dimension_numbers = #tpu.dot_dimension_numbers<[1], [1], [0], [0], [0, 0, 1, 0], [], []>} : vector<8x16xbf16>, vector<8x16xbf16>, vector<8x8xf32> -> vector<8x8xf32>
    %cst_38 = arith.constant 0.000000e+00 : f32
    %74 = vector.broadcast %cst_38 : f32 to vector<8x8xf32>
    %75 = arith.select %39, %73, %74 : vector<8x8xi1>, vector<8x8xf32>
    %76 = arith.truncf %60 : vector<8x16xf32> to vector<8x16xbf16>
    %77 = arith.truncf %64 : vector<8x16xf32> to vector<8x16xbf16>
    %cst_39 = arith.constant dense<0.000000e+00> : vector<8x8xf32>
    %78 = tpu.matmul %76, %77, %cst_39 {dimension_numbers = #tpu.dot_dimension_numbers<[1], [1], [0], [0], [0, 0, 1, 0], [], []>} : vector<8x16xbf16>, vector<8x16xbf16>, vector<8x8xf32> -> vector<8x8xf32>
    %cst_40 = arith.constant 0.000000e+00 : f32
    %79 = vector.broadcast %cst_40 : f32 to vector<8x8xf32>
    %80 = arith.select %39, %78, %79 : vector<8x8xi1>, vector<8x8xf32>
    %81 = arith.truncf %58 : vector<8x16xf32> to vector<8x16xbf16>
    %82 = arith.truncf %62 : vector<8x16xf32> to vector<8x16xbf16>
    %cst_41 = arith.constant dense<0.000000e+00> : vector<8x8xf32>
    %83 = tpu.matmul %81, %82, %cst_41 {dimension_numbers = #tpu.dot_dimension_numbers<[1], [1], [0], [0], [0, 0, 1, 0], [], []>} : vector<8x16xbf16>, vector<8x16xbf16>, vector<8x8xf32> -> vector<8x8xf32>
    %cst_42 = arith.constant 0.000000e+00 : f32
    %84 = vector.broadcast %cst_42 : f32 to vector<8x8xf32>
    %85 = arith.select %40, %83, %84 : vector<8x8xi1>, vector<8x8xf32>
    %86 = arith.truncf %58 : vector<8x16xf32> to vector<8x16xbf16>
    %87 = arith.truncf %64 : vector<8x16xf32> to vector<8x16xbf16>
    %cst_43 = arith.constant dense<0.000000e+00> : vector<8x8xf32>
    %88 = tpu.matmul %86, %87, %cst_43 {dimension_numbers = #tpu.dot_dimension_numbers<[1], [1], [0], [0], [0, 0, 1, 0], [], []>} : vector<8x16xbf16>, vector<8x16xbf16>, vector<8x8xf32> -> vector<8x8xf32>
    %cst_44 = arith.constant 0.000000e+00 : f32
    %89 = vector.broadcast %cst_44 : f32 to vector<8x8xf32>
    %90 = arith.select %40, %88, %89 : vector<8x8xi1>, vector<8x8xf32>
    %91 = arith.addf %44, %75 : vector<8x8xf32>
    %92 = arith.truncf %75 : vector<8x8xf32> to vector<8x8xbf16>
    %93 = arith.truncf %75 : vector<8x8xf32> to vector<8x8xbf16>
    %cst_45 = arith.constant dense<0.000000e+00> : vector<8x8xf32>
    %94 = tpu.matmul %92, %93, %cst_45 {dimension_numbers = #tpu.dot_dimension_numbers<[1], [0], [0], [1], [0, 0, 1, 1], [], []>} : vector<8x8xbf16>, vector<8x8xbf16>, vector<8x8xf32> -> vector<8x8xf32>
    %95 = arith.truncf %91 : vector<8x8xf32> to vector<8x8xbf16>
    %96 = arith.truncf %94 : vector<8x8xf32> to vector<8x8xbf16>
    %cst_46 = arith.constant dense<0.000000e+00> : vector<8x8xf32>
    %97 = tpu.matmul %95, %96, %cst_46 {dimension_numbers = #tpu.dot_dimension_numbers<[1], [0], [0], [1], [0, 0, 1, 1], [], []>} : vector<8x8xbf16>, vector<8x8xbf16>, vector<8x8xf32> -> vector<8x8xf32>
    %98 = arith.addf %91, %97 : vector<8x8xf32>
    %99 = arith.truncf %94 : vector<8x8xf32> to vector<8x8xbf16>
    %100 = arith.truncf %94 : vector<8x8xf32> to vector<8x8xbf16>
    %cst_47 = arith.constant dense<0.000000e+00> : vector<8x8xf32>
    %101 = tpu.matmul %99, %100, %cst_47 {dimension_numbers = #tpu.dot_dimension_numbers<[1], [0], [0], [1], [0, 0, 1, 1], [], []>} : vector<8x8xbf16>, vector<8x8xbf16>, vector<8x8xf32> -> vector<8x8xf32>
    %102 = arith.truncf %98 : vector<8x8xf32> to vector<8x8xbf16>
    %103 = arith.truncf %101 : vector<8x8xf32> to vector<8x8xbf16>
    %cst_48 = arith.constant dense<0.000000e+00> : vector<8x8xf32>
    %104 = tpu.matmul %102, %103, %cst_48 {dimension_numbers = #tpu.dot_dimension_numbers<[1], [0], [0], [1], [0, 0, 1, 1], [], []>} : vector<8x8xbf16>, vector<8x8xbf16>, vector<8x8xf32> -> vector<8x8xf32>
    %105 = arith.addf %98, %104 : vector<8x8xf32>
    %106 = arith.truncf %60 : vector<8x16xf32> to vector<8x16xbf16>
    %107 = arith.truncf %70 : vector<16x16xf32> to vector<16x16xbf16>
    %cst_49 = arith.constant dense<0.000000e+00> : vector<8x16xf32>
    %108 = tpu.matmul %106, %107, %cst_49 {dimension_numbers = #tpu.dot_dimension_numbers<[1], [0], [0], [1], [0, 0, 1, 1], [], []>} : vector<8x16xbf16>, vector<16x16xbf16>, vector<8x16xf32> -> vector<8x16xf32>
    %109 = arith.truncf %80 : vector<8x8xf32> to vector<8x8xbf16>
    %110 = arith.truncf %53 : vector<8x16xf32> to vector<8x16xbf16>
    %cst_50 = arith.constant dense<0.000000e+00> : vector<8x16xf32>
    %111 = tpu.matmul %109, %110, %cst_50 {dimension_numbers = #tpu.dot_dimension_numbers<[1], [0], [0], [1], [0, 0, 1, 1], [], []>} : vector<8x8xbf16>, vector<8x16xbf16>, vector<8x16xf32> -> vector<8x16xf32>
    %112 = arith.addf %108, %111 : vector<8x16xf32>
    %113 = arith.truncf %105 : vector<8x8xf32> to vector<8x8xbf16>
    %114 = arith.truncf %112 : vector<8x16xf32> to vector<8x16xbf16>
    %cst_51 = arith.constant dense<0.000000e+00> : vector<8x16xf32>
    %115 = tpu.matmul %113, %114, %cst_51 {dimension_numbers = #tpu.dot_dimension_numbers<[1], [0], [0], [1], [0, 0, 1, 1], [], []>} : vector<8x8xbf16>, vector<8x16xbf16>, vector<8x16xf32> -> vector<8x16xf32>
    %116 = arith.truncf %58 : vector<8x16xf32> to vector<8x16xbf16>
    %117 = arith.truncf %70 : vector<16x16xf32> to vector<16x16xbf16>
    %cst_52 = arith.constant dense<0.000000e+00> : vector<8x16xf32>
    %118 = tpu.matmul %116, %117, %cst_52 {dimension_numbers = #tpu.dot_dimension_numbers<[1], [0], [0], [1], [0, 0, 1, 1], [], []>} : vector<8x16xbf16>, vector<16x16xbf16>, vector<8x16xf32> -> vector<8x16xf32>
    %119 = arith.truncf %85 : vector<8x8xf32> to vector<8x8xbf16>
    %120 = arith.truncf %115 : vector<8x16xf32> to vector<8x16xbf16>
    %cst_53 = arith.constant dense<0.000000e+00> : vector<8x16xf32>
    %121 = tpu.matmul %119, %120, %cst_53 {dimension_numbers = #tpu.dot_dimension_numbers<[1], [0], [0], [1], [0, 0, 1, 1], [], []>} : vector<8x8xbf16>, vector<8x16xbf16>, vector<8x16xf32> -> vector<8x16xf32>
    %122 = arith.addf %118, %121 : vector<8x16xf32>
    %123 = arith.truncf %90 : vector<8x8xf32> to vector<8x8xbf16>
    %124 = arith.truncf %53 : vector<8x16xf32> to vector<8x16xbf16>
    %cst_54 = arith.constant dense<0.000000e+00> : vector<8x16xf32>
    %125 = tpu.matmul %123, %124, %cst_54 {dimension_numbers = #tpu.dot_dimension_numbers<[1], [0], [0], [1], [0, 0, 1, 1], [], []>} : vector<8x8xbf16>, vector<8x16xbf16>, vector<8x16xf32> -> vector<8x16xf32>
    %126 = arith.addf %122, %125 : vector<8x16xf32>
    %127 = vector.extract_strided_slice %25 {offsets = [7, 0], sizes = [1, 16], strides = [1, 1]} : vector<8x32xf32> to vector<1x16xf32>
    %128 = vector.broadcast %127 : vector<1x16xf32> to vector<16x16xf32>
    %129 = arith.mulf %50, %128 : vector<16x16xf32>
    %cst_55 = arith.constant dense<0.000000e+00> : vector<16xf32>
    %130 = vector.multi_reduction <add>, %129, %cst_55 [1] : vector<16x16xf32> to vector<16xf32>
    %131 = vector.shape_cast %130 : vector<16xf32> to vector<16x1xf32>
    %132 = vector.broadcast %131 : vector<16x1xf32> to vector<16x16xf32>
    %133 = arith.mulf %132, %70 : vector<16x16xf32>
    %134 = tpu.transpose %66, [1, 0] : vector<8x16xf32> -> vector<16x8xf32>
    %135 = arith.truncf %134 : vector<16x8xf32> to vector<16x8xbf16>
    %136 = arith.truncf %115 : vector<8x16xf32> to vector<8x16xbf16>
    %cst_56 = arith.constant dense<0.000000e+00> : vector<16x16xf32>
    %137 = tpu.matmul %135, %136, %cst_56 {dimension_numbers = #tpu.dot_dimension_numbers<[1], [0], [0], [1], [0, 0, 1, 1], [], []>} : vector<16x8xbf16>, vector<8x16xbf16>, vector<16x16xf32> -> vector<16x16xf32>
    %138 = arith.addf %133, %137 : vector<16x16xf32>
    %139 = tpu.transpose %68, [1, 0] : vector<8x16xf32> -> vector<16x8xf32>
    %140 = arith.truncf %139 : vector<16x8xf32> to vector<16x8xbf16>
    %141 = arith.truncf %53 : vector<8x16xf32> to vector<8x16xbf16>
    %cst_57 = arith.constant dense<0.000000e+00> : vector<16x16xf32>
    %142 = tpu.matmul %140, %141, %cst_57 {dimension_numbers = #tpu.dot_dimension_numbers<[1], [0], [0], [1], [0, 0, 1, 1], [], []>} : vector<16x8xbf16>, vector<8x16xbf16>, vector<16x16xf32> -> vector<16x16xf32>
    %143 = arith.addf %138, %142 : vector<16x16xf32>
    %c0_58 = arith.constant 0 : index
    %c0_59 = arith.constant 0 : index
    %c0_60 = arith.constant 0 : index
    %144 = vector.load %arg14[%c0_58, %c0_59, %c0_60] : memref<2x16x16xf32, #tpu.memory_space<vmem>>, vector<1x16x16xf32>
    %145 = vector.shape_cast %144 : vector<1x16x16xf32> to vector<16x16xf32>
    %146 = vector.shape_cast %143 : vector<16x16xf32> to vector<1x16x16xf32>
    tpu.vector_store %arg14[%c0_58, %c0_59, %c0_60], %146 {strides = array<i32>} : memref<2x16x16xf32, #tpu.memory_space<vmem>>, vector<1x16x16xf32>,
    %cst_61 = arith.constant dense<0.000000e+00> : vector<8xf32>
    %147 = vector.multi_reduction <add>, %126, %cst_61 [1] : vector<8x16xf32> to vector<8xf32>
    %148 = vector.shape_cast %147 : vector<8xf32> to vector<8x1xf32>
    %cst_62 = arith.constant 1.600000e+01 : f32
    %149 = vector.broadcast %cst_62 : f32 to vector<8x1xf32>
    %150 = arith.divf %148, %149 : vector<8x1xf32>
    %151 = vector.broadcast %150 : vector<8x1xf32> to vector<8x16xf32>
    %152 = arith.subf %126, %151 : vector<8x16xf32>
    %153 = arith.mulf %152, %152 : vector<8x16xf32>
    %cst_63 = arith.constant dense<0.000000e+00> : vector<8xf32>
    %154 = vector.multi_reduction <add>, %153, %cst_63 [1] : vector<8x16xf32> to vector<8xf32>
    %155 = vector.shape_cast %154 : vector<8xf32> to vector<8x1xf32>
    %cst_64 = arith.constant 1.600000e+01 : f32
    %156 = vector.broadcast %cst_64 : f32 to vector<8x1xf32>
    %157 = arith.divf %155, %156 : vector<8x1xf32>
    %158 = vector.broadcast %150 : vector<8x1xf32> to vector<8x16xf32>
    %159 = arith.subf %126, %158 : vector<8x16xf32>
    %cst_65 = arith.constant 6.400000e-04 : f32
    %160 = vector.broadcast %cst_65 : f32 to vector<8x1xf32>
    %161 = arith.addf %157, %160 : vector<8x1xf32>
    %162 = math.rsqrt %161 : vector<8x1xf32>
    %163 = vector.broadcast %162 : vector<8x1xf32> to vector<8x16xf32>
    %164 = arith.mulf %159, %163 : vector<8x16xf32>
    %165 = vector.extract_strided_slice %34 {offsets = [0, 0], sizes = [1, 16], strides = [1, 1]} : vector<1x32xf32> to vector<1x16xf32>
    %166 = vector.broadcast %165 : vector<1x16xf32> to vector<8x16xf32>
    %167 = arith.mulf %164, %166 : vector<8x16xf32>
    %168 = vector.extract_strided_slice %35 {offsets = [0, 0], sizes = [1, 16], strides = [1, 1]} : vector<1x32xf32> to vector<1x16xf32>
    %169 = vector.broadcast %168 : vector<1x16xf32> to vector<8x16xf32>
    %170 = arith.addf %167, %169 : vector<8x16xf32>
    %171 = arith.mulf %51, %52 : vector<8x16xf32>
    %172 = vector.extract_strided_slice %36 {offsets = [0, 0], sizes = [1, 16], strides = [1, 1]} : vector<1x32xf32> to vector<1x16xf32>
    %173 = vector.broadcast %172 : vector<1x16xf32> to vector<8x16xf32>
    %174 = arith.mulf %171, %173 : vector<8x16xf32>
    %cst_66 = arith.constant dense<0.000000e+00> : vector<8xf32>
    %175 = vector.multi_reduction <add>, %174, %cst_66 [1] : vector<8x16xf32> to vector<8xf32>
    %176 = vector.shape_cast %175 : vector<8xf32> to vector<8x1xf32>
    %177 = vector.broadcast %176 : vector<8x1xf32> to vector<8x16xf32>
    %178 = arith.mulf %177, %53 : vector<8x16xf32>
    %179 = arith.addf %170, %178 : vector<8x16xf32>
    %180 = arith.mulf %179, %56 : vector<8x16xf32>
    %181 = vector.extract_strided_slice %5 {offsets = [0, 16], sizes = [8, 16], strides = [1, 1]} : vector<8x32xf32> to vector<8x16xf32>
    %182 = vector.extract_strided_slice %8 {offsets = [0, 16], sizes = [8, 16], strides = [1, 1]} : vector<8x32xf32> to vector<8x16xf32>
    %183 = vector.extract_strided_slice %11 {offsets = [0, 16], sizes = [8, 16], strides = [1, 1]} : vector<8x32xf32> to vector<8x16xf32>
    %184 = vector.extract_strided_slice %14 {offsets = [0, 16], sizes = [8, 16], strides = [1, 1]} : vector<8x32xf32> to vector<8x16xf32>
    %185 = vector.extract_strided_slice %17 {offsets = [0, 16], sizes = [8, 16], strides = [1, 1]} : vector<8x32xf32> to vector<8x16xf32>
    %186 = vector.extract_strided_slice %20 {offsets = [0, 16], sizes = [8, 16], strides = [1, 1]} : vector<8x32xf32> to vector<8x16xf32>
    %187 = vector.extract_strided_slice %25 {offsets = [0, 16], sizes = [8, 16], strides = [1, 1]} : vector<8x32xf32> to vector<8x16xf32>
    %188 = arith.mulf %181, %187 : vector<8x16xf32>
    %189 = vector.extract_strided_slice %26 {offsets = [0, 16], sizes = [8, 16], strides = [1, 1]} : vector<8x32xf32> to vector<8x16xf32>
    %190 = arith.mulf %184, %189 : vector<8x16xf32>
    %191 = vector.extract_strided_slice %29 {offsets = [0, 16], sizes = [8, 16], strides = [1, 1]} : vector<8x32xf32> to vector<8x16xf32>
    %192 = arith.mulf %185, %191 : vector<8x16xf32>
    %193 = vector.extract_strided_slice %29 {offsets = [0, 16], sizes = [8, 16], strides = [1, 1]} : vector<8x32xf32> to vector<8x16xf32>
    %194 = arith.mulf %182, %193 : vector<8x16xf32>
    %195 = vector.extract_strided_slice %33 {offsets = [0, 16], sizes = [8, 16], strides = [1, 1]} : vector<8x32xf32> to vector<8x16xf32>
    %196 = arith.mulf %185, %195 : vector<8x16xf32>
    %197 = vector.extract_strided_slice %33 {offsets = [0, 16], sizes = [8, 16], strides = [1, 1]} : vector<8x32xf32> to vector<8x16xf32>
    %198 = arith.mulf %182, %197 : vector<8x16xf32>
    %c1 = arith.constant 1 : index
    %c0_67 = arith.constant 0 : index
    %c0_68 = arith.constant 0 : index
    %199 = vector.load %arg14[%c1, %c0_67, %c0_68] : memref<2x16x16xf32, #tpu.memory_space<vmem>>, vector<1x16x16xf32>
    %200 = vector.shape_cast %199 : vector<1x16x16xf32> to vector<16x16xf32>
    %201 = arith.truncf %190 : vector<8x16xf32> to vector<8x16xbf16>
    %202 = arith.truncf %192 : vector<8x16xf32> to vector<8x16xbf16>
    %cst_69 = arith.constant dense<0.000000e+00> : vector<8x8xf32>
    %203 = tpu.matmul %201, %202, %cst_69 {dimension_numbers = #tpu.dot_dimension_numbers<[1], [1], [0], [0], [0, 0, 1, 0], [], []>} : vector<8x16xbf16>, vector<8x16xbf16>, vector<8x8xf32> -> vector<8x8xf32>
    %cst_70 = arith.constant 0.000000e+00 : f32
    %204 = vector.broadcast %cst_70 : f32 to vector<8x8xf32>
    %205 = arith.select %39, %203, %204 : vector<8x8xi1>, vector<8x8xf32>
    %206 = arith.truncf %190 : vector<8x16xf32> to vector<8x16xbf16>
    %207 = arith.truncf %194 : vector<8x16xf32> to vector<8x16xbf16>
    %cst_71 = arith.constant dense<0.000000e+00> : vector<8x8xf32>
    %208 = tpu.matmul %206, %207, %cst_71 {dimension_numbers = #tpu.dot_dimension_numbers<[1], [1], [0], [0], [0, 0, 1, 0], [], []>} : vector<8x16xbf16>, vector<8x16xbf16>, vector<8x8xf32> -> vector<8x8xf32>
    %cst_72 = arith.constant 0.000000e+00 : f32
    %209 = vector.broadcast %cst_72 : f32 to vector<8x8xf32>
    %210 = arith.select %39, %208, %209 : vector<8x8xi1>, vector<8x8xf32>
    %211 = arith.truncf %188 : vector<8x16xf32> to vector<8x16xbf16>
    %212 = arith.truncf %192 : vector<8x16xf32> to vector<8x16xbf16>
    %cst_73 = arith.constant dense<0.000000e+00> : vector<8x8xf32>
    %213 = tpu.matmul %211, %212, %cst_73 {dimension_numbers = #tpu.dot_dimension_numbers<[1], [1], [0], [0], [0, 0, 1, 0], [], []>} : vector<8x16xbf16>, vector<8x16xbf16>, vector<8x8xf32> -> vector<8x8xf32>
    %cst_74 = arith.constant 0.000000e+00 : f32
    %214 = vector.broadcast %cst_74 : f32 to vector<8x8xf32>
    %215 = arith.select %40, %213, %214 : vector<8x8xi1>, vector<8x8xf32>
    %216 = arith.truncf %188 : vector<8x16xf32> to vector<8x16xbf16>
    %217 = arith.truncf %194 : vector<8x16xf32> to vector<8x16xbf16>
    %cst_75 = arith.constant dense<0.000000e+00> : vector<8x8xf32>
    %218 = tpu.matmul %216, %217, %cst_75 {dimension_numbers = #tpu.dot_dimension_numbers<[1], [1], [0], [0], [0, 0, 1, 0], [], []>} : vector<8x16xbf16>, vector<8x16xbf16>, vector<8x8xf32> -> vector<8x8xf32>
    %cst_76 = arith.constant 0.000000e+00 : f32
    %219 = vector.broadcast %cst_76 : f32 to vector<8x8xf32>
    %220 = arith.select %40, %218, %219 : vector<8x8xi1>, vector<8x8xf32>
    %221 = arith.addf %44, %205 : vector<8x8xf32>
    %222 = arith.truncf %205 : vector<8x8xf32> to vector<8x8xbf16>
    %223 = arith.truncf %205 : vector<8x8xf32> to vector<8x8xbf16>
    %cst_77 = arith.constant dense<0.000000e+00> : vector<8x8xf32>
    %224 = tpu.matmul %222, %223, %cst_77 {dimension_numbers = #tpu.dot_dimension_numbers<[1], [0], [0], [1], [0, 0, 1, 1], [], []>} : vector<8x8xbf16>, vector<8x8xbf16>, vector<8x8xf32> -> vector<8x8xf32>
    %225 = arith.truncf %221 : vector<8x8xf32> to vector<8x8xbf16>
    %226 = arith.truncf %224 : vector<8x8xf32> to vector<8x8xbf16>
    %cst_78 = arith.constant dense<0.000000e+00> : vector<8x8xf32>
    %227 = tpu.matmul %225, %226, %cst_78 {dimension_numbers = #tpu.dot_dimension_numbers<[1], [0], [0], [1], [0, 0, 1, 1], [], []>} : vector<8x8xbf16>, vector<8x8xbf16>, vector<8x8xf32> -> vector<8x8xf32>
    %228 = arith.addf %221, %227 : vector<8x8xf32>
    %229 = arith.truncf %224 : vector<8x8xf32> to vector<8x8xbf16>
    %230 = arith.truncf %224 : vector<8x8xf32> to vector<8x8xbf16>
    %cst_79 = arith.constant dense<0.000000e+00> : vector<8x8xf32>
    %231 = tpu.matmul %229, %230, %cst_79 {dimension_numbers = #tpu.dot_dimension_numbers<[1], [0], [0], [1], [0, 0, 1, 1], [], []>} : vector<8x8xbf16>, vector<8x8xbf16>, vector<8x8xf32> -> vector<8x8xf32>
    %232 = arith.truncf %228 : vector<8x8xf32> to vector<8x8xbf16>
    %233 = arith.truncf %231 : vector<8x8xf32> to vector<8x8xbf16>
    %cst_80 = arith.constant dense<0.000000e+00> : vector<8x8xf32>
    %234 = tpu.matmul %232, %233, %cst_80 {dimension_numbers = #tpu.dot_dimension_numbers<[1], [0], [0], [1], [0, 0, 1, 1], [], []>} : vector<8x8xbf16>, vector<8x8xbf16>, vector<8x8xf32> -> vector<8x8xf32>
    %235 = arith.addf %228, %234 : vector<8x8xf32>
    %236 = arith.truncf %190 : vector<8x16xf32> to vector<8x16xbf16>
    %237 = arith.truncf %200 : vector<16x16xf32> to vector<16x16xbf16>
    %cst_81 = arith.constant dense<0.000000e+00> : vector<8x16xf32>
    %238 = tpu.matmul %236, %237, %cst_81 {dimension_numbers = #tpu.dot_dimension_numbers<[1], [0], [0], [1], [0, 0, 1, 1], [], []>} : vector<8x16xbf16>, vector<16x16xbf16>, vector<8x16xf32> -> vector<8x16xf32>
    %239 = arith.truncf %210 : vector<8x8xf32> to vector<8x8xbf16>
    %240 = arith.truncf %183 : vector<8x16xf32> to vector<8x16xbf16>
    %cst_82 = arith.constant dense<0.000000e+00> : vector<8x16xf32>
    %241 = tpu.matmul %239, %240, %cst_82 {dimension_numbers = #tpu.dot_dimension_numbers<[1], [0], [0], [1], [0, 0, 1, 1], [], []>} : vector<8x8xbf16>, vector<8x16xbf16>, vector<8x16xf32> -> vector<8x16xf32>
    %242 = arith.addf %238, %241 : vector<8x16xf32>
    %243 = arith.truncf %235 : vector<8x8xf32> to vector<8x8xbf16>
    %244 = arith.truncf %242 : vector<8x16xf32> to vector<8x16xbf16>
    %cst_83 = arith.constant dense<0.000000e+00> : vector<8x16xf32>
    %245 = tpu.matmul %243, %244, %cst_83 {dimension_numbers = #tpu.dot_dimension_numbers<[1], [0], [0], [1], [0, 0, 1, 1], [], []>} : vector<8x8xbf16>, vector<8x16xbf16>, vector<8x16xf32> -> vector<8x16xf32>
    %246 = arith.truncf %188 : vector<8x16xf32> to vector<8x16xbf16>
    %247 = arith.truncf %200 : vector<16x16xf32> to vector<16x16xbf16>
    %cst_84 = arith.constant dense<0.000000e+00> : vector<8x16xf32>
    %248 = tpu.matmul %246, %247, %cst_84 {dimension_numbers = #tpu.dot_dimension_numbers<[1], [0], [0], [1], [0, 0, 1, 1], [], []>} : vector<8x16xbf16>, vector<16x16xbf16>, vector<8x16xf32> -> vector<8x16xf32>
    %249 = arith.truncf %215 : vector<8x8xf32> to vector<8x8xbf16>
    %250 = arith.truncf %245 : vector<8x16xf32> to vector<8x16xbf16>
    %cst_85 = arith.constant dense<0.000000e+00> : vector<8x16xf32>
    %251 = tpu.matmul %249, %250, %cst_85 {dimension_numbers = #tpu.dot_dimension_numbers<[1], [0], [0], [1], [0, 0, 1, 1], [], []>} : vector<8x8xbf16>, vector<8x16xbf16>, vector<8x16xf32> -> vector<8x16xf32>
    %252 = arith.addf %248, %251 : vector<8x16xf32>
    %253 = arith.truncf %220 : vector<8x8xf32> to vector<8x8xbf16>
    %254 = arith.truncf %183 : vector<8x16xf32> to vector<8x16xbf16>
    %cst_86 = arith.constant dense<0.000000e+00> : vector<8x16xf32>
    %255 = tpu.matmul %253, %254, %cst_86 {dimension_numbers = #tpu.dot_dimension_numbers<[1], [0], [0], [1], [0, 0, 1, 1], [], []>} : vector<8x8xbf16>, vector<8x16xbf16>, vector<8x16xf32> -> vector<8x16xf32>
    %256 = arith.addf %252, %255 : vector<8x16xf32>
    %257 = vector.extract_strided_slice %25 {offsets = [7, 16], sizes = [1, 16], strides = [1, 1]} : vector<8x32xf32> to vector<1x16xf32>
    %258 = vector.broadcast %257 : vector<1x16xf32> to vector<16x16xf32>
    %259 = arith.mulf %50, %258 : vector<16x16xf32>
    %cst_87 = arith.constant dense<0.000000e+00> : vector<16xf32>
    %260 = vector.multi_reduction <add>, %259, %cst_87 [1] : vector<16x16xf32> to vector<16xf32>
    %261 = vector.shape_cast %260 : vector<16xf32> to vector<16x1xf32>
    %262 = vector.broadcast %261 : vector<16x1xf32> to vector<16x16xf32>
    %263 = arith.mulf %262, %200 : vector<16x16xf32>
    %264 = tpu.transpose %196, [1, 0] : vector<8x16xf32> -> vector<16x8xf32>
    %265 = arith.truncf %264 : vector<16x8xf32> to vector<16x8xbf16>
    %266 = arith.truncf %245 : vector<8x16xf32> to vector<8x16xbf16>
    %cst_88 = arith.constant dense<0.000000e+00> : vector<16x16xf32>
    %267 = tpu.matmul %265, %266, %cst_88 {dimension_numbers = #tpu.dot_dimension_numbers<[1], [0], [0], [1], [0, 0, 1, 1], [], []>} : vector<16x8xbf16>, vector<8x16xbf16>, vector<16x16xf32> -> vector<16x16xf32>
    %268 = arith.addf %263, %267 : vector<16x16xf32>
    %269 = tpu.transpose %198, [1, 0] : vector<8x16xf32> -> vector<16x8xf32>
    %270 = arith.truncf %269 : vector<16x8xf32> to vector<16x8xbf16>
    %271 = arith.truncf %183 : vector<8x16xf32> to vector<8x16xbf16>
    %cst_89 = arith.constant dense<0.000000e+00> : vector<16x16xf32>
    %272 = tpu.matmul %270, %271, %cst_89 {dimension_numbers = #tpu.dot_dimension_numbers<[1], [0], [0], [1], [0, 0, 1, 1], [], []>} : vector<16x8xbf16>, vector<8x16xbf16>, vector<16x16xf32> -> vector<16x16xf32>
    %273 = arith.addf %268, %272 : vector<16x16xf32>
    %c1_90 = arith.constant 1 : index
    %c0_91 = arith.constant 0 : index
    %c0_92 = arith.constant 0 : index
    %274 = vector.load %arg14[%c1_90, %c0_91, %c0_92] : memref<2x16x16xf32, #tpu.memory_space<vmem>>, vector<1x16x16xf32>
    %275 = vector.shape_cast %274 : vector<1x16x16xf32> to vector<16x16xf32>
    %276 = vector.shape_cast %273 : vector<16x16xf32> to vector<1x16x16xf32>
    tpu.vector_store %arg14[%c1_90, %c0_91, %c0_92], %276 {strides = array<i32>} : memref<2x16x16xf32, #tpu.memory_space<vmem>>, vector<1x16x16xf32>,
    %cst_93 = arith.constant dense<0.000000e+00> : vector<8xf32>
    %277 = vector.multi_reduction <add>, %256, %cst_93 [1] : vector<8x16xf32> to vector<8xf32>
    %278 = vector.shape_cast %277 : vector<8xf32> to vector<8x1xf32>
    %cst_94 = arith.constant 1.600000e+01 : f32
    %279 = vector.broadcast %cst_94 : f32 to vector<8x1xf32>
    %280 = arith.divf %278, %279 : vector<8x1xf32>
    %281 = vector.broadcast %280 : vector<8x1xf32> to vector<8x16xf32>
    %282 = arith.subf %256, %281 : vector<8x16xf32>
    %283 = arith.mulf %282, %282 : vector<8x16xf32>
    %cst_95 = arith.constant dense<0.000000e+00> : vector<8xf32>
    %284 = vector.multi_reduction <add>, %283, %cst_95 [1] : vector<8x16xf32> to vector<8xf32>
    %285 = vector.shape_cast %284 : vector<8xf32> to vector<8x1xf32>
    %cst_96 = arith.constant 1.600000e+01 : f32
    %286 = vector.broadcast %cst_96 : f32 to vector<8x1xf32>
    %287 = arith.divf %285, %286 : vector<8x1xf32>
    %288 = vector.broadcast %280 : vector<8x1xf32> to vector<8x16xf32>
    %289 = arith.subf %256, %288 : vector<8x16xf32>
    %cst_97 = arith.constant 6.400000e-04 : f32
    %290 = vector.broadcast %cst_97 : f32 to vector<8x1xf32>
    %291 = arith.addf %287, %290 : vector<8x1xf32>
    %292 = math.rsqrt %291 : vector<8x1xf32>
    %293 = vector.broadcast %292 : vector<8x1xf32> to vector<8x16xf32>
    %294 = arith.mulf %289, %293 : vector<8x16xf32>
    %295 = vector.extract_strided_slice %34 {offsets = [0, 16], sizes = [1, 16], strides = [1, 1]} : vector<1x32xf32> to vector<1x16xf32>
    %296 = vector.broadcast %295 : vector<1x16xf32> to vector<8x16xf32>
    %297 = arith.mulf %294, %296 : vector<8x16xf32>
    %298 = vector.extract_strided_slice %35 {offsets = [0, 16], sizes = [1, 16], strides = [1, 1]} : vector<1x32xf32> to vector<1x16xf32>
    %299 = vector.broadcast %298 : vector<1x16xf32> to vector<8x16xf32>
    %300 = arith.addf %297, %299 : vector<8x16xf32>
    %301 = arith.mulf %181, %182 : vector<8x16xf32>
    %302 = vector.extract_strided_slice %36 {offsets = [0, 16], sizes = [1, 16], strides = [1, 1]} : vector<1x32xf32> to vector<1x16xf32>
    %303 = vector.broadcast %302 : vector<1x16xf32> to vector<8x16xf32>
    %304 = arith.mulf %301, %303 : vector<8x16xf32>
    %cst_98 = arith.constant dense<0.000000e+00> : vector<8xf32>
    %305 = vector.multi_reduction <add>, %304, %cst_98 [1] : vector<8x16xf32> to vector<8xf32>
    %306 = vector.shape_cast %305 : vector<8xf32> to vector<8x1xf32>
    %307 = vector.broadcast %306 : vector<8x1xf32> to vector<8x16xf32>
    %308 = arith.mulf %307, %183 : vector<8x16xf32>
    %309 = arith.addf %300, %308 : vector<8x16xf32>
    %310 = arith.mulf %309, %186 : vector<8x16xf32>
    %311 = tpu.concatenate %180, %310 in 1 : vector<8x16xf32>, vector<8x16xf32> -> vector<8x32xf32>
    %312 = arith.truncf %311 : vector<8x32xf32> to vector<8x32xbf16>
    %c0_99 = arith.constant 0 : index
    %c0_100 = arith.constant 0 : index
    %c0_101 = arith.constant 0 : index
    %313 = vector.load %arg13[%c0_99, %c0_100, %c0_101] : memref<1x8x32xbf16, #tpu.memory_space<vmem>>, vector<1x8x32xbf16>
    %314 = vector.shape_cast %313 : vector<1x8x32xbf16> to vector<8x32xbf16>
    %315 = vector.shape_cast %312 : vector<8x32xbf16> to vector<1x8x32xbf16>
    tpu.vector_store %arg13[%c0_99, %c0_100, %c0_101], %315 {strides = array<i32>} : memref<1x8x32xbf16, #tpu.memory_space<vmem>>, vector<1x8x32xbf16>,
    return
  }
  func.func @transform_0(%arg0: i32, %arg1: i32) -> (i32, i32, i32) {
    %c0_i32 = arith.constant 0 : i32
    %c0_i32_0 = arith.constant 0 : i32
    return %arg0, %arg1, %c0_i32 : i32, i32, i32
  }
  func.func @transform_1(%arg0: i32, %arg1: i32) -> (i32, i32, i32) {
    %c0_i32 = arith.constant 0 : i32
    %c0_i32_0 = arith.constant 0 : i32
    return %arg0, %arg1, %c0_i32 : i32, i32, i32
  }
  func.func @transform_2(%arg0: i32, %arg1: i32) -> (i32, i32, i32) {
    %c0_i32 = arith.constant 0 : i32
    %c0_i32_0 = arith.constant 0 : i32
    return %arg0, %arg1, %c0_i32 : i32, i32, i32
  }
  func.func @transform_3(%arg0: i32, %arg1: i32) -> (i32, i32, i32) {
    %c0_i32 = arith.constant 0 : i32
    %c0_i32_0 = arith.constant 0 : i32
    return %arg0, %arg1, %c0_i32 : i32, i32, i32
  }
  func.func @transform_4(%arg0: i32, %arg1: i32) -> (i32, i32, i32) {
    %c0_i32 = arith.constant 0 : i32
    %c0_i32_0 = arith.constant 0 : i32
    return %arg0, %arg1, %c0_i32 : i32, i32, i32
  }
  func.func @transform_5(%arg0: i32, %arg1: i32) -> (i32, i32, i32) {
    %c0_i32 = arith.constant 0 : i32
    %c0_i32_0 = arith.constant 0 : i32
    return %arg0, %arg1, %c0_i32 : i32, i32, i32
  }
  func.func @transform_6(%arg0: i32, %arg1: i32) -> (i32, i32, i32) {
    %c0_i32 = arith.constant 0 : i32
    %c0_i32_0 = arith.constant 0 : i32
    return %arg0, %arg1, %c0_i32 : i32, i32, i32
  }
  func.func @transform_7(%arg0: i32, %arg1: i32) -> (i32, i32, i32) {
    %c0_i32 = arith.constant 0 : i32
    %c0_i32_0 = arith.constant 0 : i32
    return %arg0, %arg1, %c0_i32 : i32, i32, i32
  }
  func.func @transform_8(%arg0: i32, %arg1: i32) -> (i32, i32) {
    %c0_i32 = arith.constant 0 : i32
    %c0_i32_0 = arith.constant 0 : i32
    %c0_i32_1 = arith.constant 0 : i32
    return %c0_i32, %c0_i32_0 : i32, i32
  }
  func.func @transform_9(%arg0: i32, %arg1: i32) -> (i32, i32) {
    %c0_i32 = arith.constant 0 : i32
    %c0_i32_0 = arith.constant 0 : i32
    %c0_i32_1 = arith.constant 0 : i32
    return %c0_i32, %c0_i32_0 : i32, i32
  }
  func.func @transform_10(%arg0: i32, %arg1: i32) -> (i32, i32) {
    %c0_i32 = arith.constant 0 : i32
    %c0_i32_0 = arith.constant 0 : i32
    %c0_i32_1 = arith.constant 0 : i32
    return %c0_i32, %c0_i32_0 : i32, i32
  }
  func.func @transform_11(%arg0: i32, %arg1: i32) -> (i32, i32, i32) {
    %c0_i32 = arith.constant 0 : i32
    %c0_i32_0 = arith.constant 0 : i32
    return %arg0, %arg1, %c0_i32 : i32, i32, i32
  }
}

</mosaic_0001>

<bundles_post_ra>
// kernel: time_mixer_forward.1
= control target key start
LH: loop header
LB: loop body
LE: loop exit
PB: predicated region body
PF: predicated region fallthrough
CT: control target
= control target key end

     0   :  { %s4720_s0 = inlined_call_operand.hbm [shape: bf16[2,8,32], index: 0, kind: input, shape index: {}]   ;;  %s4721_s1 = inlined_call_operand.hbm [shape: bf16[2,8,32], index: 1, kind: input, shape index: {}]   ;;  %s4722_s2 = inlined_call_operand.hbm [shape: bf16[2,8,32], index: 2, kind: input, shape index: {}]   ;;  %s4723_s3 = inlined_call_operand.hbm [shape: bf16[2,8,32], index: 3, kind: input, shape index: {}]   ;;  %s4724_s4 = inlined_call_operand.hbm [shape: bf16[2,8,32], index: 4, kind: input, shape index: {}]   ;;  %s4725_s5 = inlined_call_operand.hbm [shape: bf16[2,8,32], index: 5, kind: input, shape index: {}]   ;;  %s4726_s6 = inlined_call_operand.hbm [shape: f32[2,8,32], index: 6, kind: input, shape index: {}]   ;;  %s4727_s7 = inlined_call_operand.hbm [shape: f32[2,8,32], index: 7, kind: input, shape index: {}]   ;;  %s4728_s8 = inlined_call_operand.hbm [shape: f32[1,32], index: 8, kind: input, shape index: {}]   ;;  %s4729_s9 = inlined_call_operand.hbm [shape: f32[1,32], index: 9, kind: input, shape index: {}]   ;;  %s4730_s10 = inlined_call_operand.hbm [shape: f32[1,32], index: 10, kind: input, shape index: {}]   ;;  %s4731_s11 = inlined_call_operand.hbm [shape: bf16[2,8,32], index: 11, kind: output, shape index: {}]  }
   0x1   :  { %4755 = sst [smem:[#allocation39_spill]] %s4721_s1 }
   0x2   :  { %4756 = sst [smem:[#allocation40_spill]] %s4723_s3 }
   0x3   :  { %4757 = sst [smem:[#allocation41_spill]] %s4728_s8 }
   0x4   :  { %4758 = sst [smem:[#allocation42_spill]] %s4729_s9 }
   0x5   :  { %4759 = sst [smem:[#allocation43_spill]] %s4731_s11 }
   0x6   :  { %16 = vsyncpa [#allocation4], 0 }
   0x7   :  { %18 = vsyncpa [#allocation4 + $0x1], 0 }
   0x8   :  { %19 = vsyncpa [#allocation7], 0 }
   0x9   :  { %21 = vsyncpa [#allocation7 + $0x1], 0 }
   0xa   :  { %22 = vsyncpa [#allocation10], 0 }
   0xb   :  { %24 = vsyncpa [#allocation10 + $0x1], 0 }
   0xc   :  { %25 = vsyncpa [#allocation13], 0 }
   0xd   :  { %27 = vsyncpa [#allocation13 + $0x1], 0 }
   0xe   :  { %28 = vsyncpa [#allocation16], 0 }
   0xf   :  { %30 = vsyncpa [#allocation16 + $0x1], 0 }
  0x10   :  { %31 = vsyncpa [#allocation19], 0 }
  0x11   :  { %32 = vsyncpa [#allocation5], 0 }
  0x12   :  { %34 = vsyncpa [#allocation5 + $0x1], 0  ;;  %s3849_s17 = smov 0   ;;  %s3851_s18 = smov 0  }
  0x13   :  { %s3853_s19 = smov 0   ;;  %s3855_s20 = smov 0  }
  0x14   :  { %s3857_s21 = smov 0   ;;  %s3859_s22 = smov 0  }
  0x15 LB: > { %4760 = sst [smem:[#allocation30_spill]] %s3751_s17  ;;  %s3880_s23 = sadd.s32 4294967295, %s3771_s22   ;;  %s3771_s22 = sphi %s3859_s22, %s40_s22   ;;  %s3767_s21 = sphi %s3857_s21, %s4821_s21   ;;  %s3763_s20 = sphi %s3855_s20, %s4820_s20   ;;  %s3759_s19 = sphi %s3853_s19, %s4819_s19   ;;  %s3755_s18 = sphi %s3851_s18, %s4818_s18   ;;  %s3751_s17 = sphi %s3849_s17, %s4816_s17  }
  0x16   : > { %4761 = sst [smem:[#allocation31_spill]] %s3755_s18  ;;  %s2805_s24 = sadd.s32 4294967294, %s3771_s22  }
  0x17   : > { %4762 = sst [smem:[#allocation32_spill]] %s3763_s20  ;;  %p68_p0 = scmp.ne.s32.totalorder %s3759_s19, %s3755_s18 }
  0x18   : > { %4763 = sst [smem:[#allocation33_spill]] %s3771_s22  ;;  %p69_p1 = scmp.eq.s32.totalorder %s3771_s22, 0 }
  0x19   : > { %4764 = sst [smem:[#allocation34_spill]] %s3880_s23  ;;  %p74_p2 = scmp.ne.s32.totalorder %s3755_s18, %s3751_s17 }
  0x1a   : > { %p4737_p3 = scmp.eq.s32.totalorder %s3880_s23, 0  ;;  %p359_p4 = scmp.eq.s32.totalorder %s3880_s23, 1 }
  0x1b   : > { %p3891_p5 = por %p69_p1, %p68_p0  ;;  %p365_p6 = scmp.eq.s32.totalorder %s2805_s24, 1 }
  0x1c   : > { %p3897_p7 = por %p4737_p3, %p74_p2  ;;  %p3901_p8 = por %p359_p4, %p68_p0 }
  0x1d   : > { %p3905_p9 = por %p365_p6, %p74_p2  ;;  %p2806_p10 = scmp.ge.s32.totalorder %s3771_s22, 1 }
  0x1e   : > { %s4766_s27 = scalar_select %p3897_p7, 1, 0 }
  0x1f   : > { %s4768_s28 = scalar_select %p3901_p8, 1, 0 }
  0x20   : > { %4767 = sst [smem:[#allocation35_spill]] %s4766_s27  ;;  %p372_p11 = scmp.lt.s32.totalorder %s3771_s22, 3 }
  0x21   : > { %4769 = sst [smem:[#allocation36_spill]] %s4768_s28  ;;  %s3773_s12 = smov [#allocation17]  }
  0x22   : > { %s4770_s29 = scalar_select %p3905_p9, 1, 0 }
  0x23   : > { %p3912_p13 = pnand %p2806_p10, %p372_p11  ;;  %s385_s13 = sshll.u32 %s3773_s12, 4  ;;  %s386_s13 = int_to_ptr.vmem [resolvable:$true] %s385_s13 }
  0x24   : > { %4771 = sst [smem:[#allocation37_spill]] %s4770_s29  ;;  %p3244_p1 = scmp.lt.s32.totalorder %s3771_s22, 2 }
  0x25   : > { %s4772_s30 = scalar_select %p3912_p13, 1, 0 }
  0x26   : > { %p3202_p0 = pneg %p3912_p13  ;;  %p3921_p4 = pnand %p3244_p1, %p3891_p5 }
  0x27   : > { %s3774_s15 = smov [#allocation18]   ;;  %s4775_s8 = sld [smem:[#allocation41_spill]] }
  0x28   : > { %s4773_s14 = scalar_select %p3921_p4, 1, 0 }
  0x29   : > { %s396_s16 = sshll.u32 %s3774_s15, 4  ;;  %p3927_p2 = pnand %p3202_p0, %p4737_p3  ;;  %s3931_s16 = int_to_ptr.vmem [resolvable:$true] %s396_s16 }
  0x2b   : > { %s4774_s24 = scalar_select %p3927_p2, 1, 0 }
  0x2c   : > { %p3941_p6 = pneg %p3927_p2 }
  0x2d   : > { %s3341_s29 = scalar_lea.hbm %s4775_s8, 16 }
  0x2e   : > { %p3342_p5 = scmp.ne.s32.totalorder %s4775_s8, %s3341_s29  ;;  %p3348_p1 = scmp.lt.u32.totalorder %s3341_s29, %s4775_s8 }
  0x2f   : > { %s4776_s11 = scalar_select %p3941_p6, 1, 0 }
  0x30   : > { %p3344_p10 = pnand %p3941_p6, %p3342_p5 }
  0x32   : > { %p3345_p11 = pneg %p3344_p10 }
  0x34   : > { %p3350_p0 = pnand %p3348_p1, %p3345_p11 }
  0x36   : > { %3353 = shalt.err (!%p3350_p0)
}
  0x37   : > { %s3354_s25 = scalar_lea.vmem %s386_s13, 16  ;;  %s3361_s17 = scalar_lea.vmem %s386_s13, 32 }
  0x38   : > { %p3355_p12 = scmp.ne.s32.totalorder %s386_s13, %s3354_s25  ;;  %p3362_p8 = scmp.lt.s32.totalorder %s386_s13, %s386_s13 }
  0x39   : > { %p3363_p7 = scmp.lt.s32.totalorder %s3361_s17, %s3354_s25 }
  0x3a   : > { %p3357_p3 = pnand %p3355_p12, %p3941_p6 }
  0x3b   : > { %p3364_p13 = por %p3363_p7, %p3362_p8 }
  0x3c   : > { %p3358_p9 = pneg %p3357_p3 }
  0x3e   : > { %p3365_p4 = pnand %p3364_p13, %p3358_p9 }
  0x40   : > { %3368 = shalt.err (!%p3365_p4)
}
  0x41   : > { %3205 = dma.hbm_to_vmem [thread:$0]  (!%p3927_p2), %s4775_s8, 16, %s386_s13, [#allocation16]  }
  0x42   : > { %s4777_s9 = sld [smem:[#allocation42_spill]] }
  0x48   : > { %s3369_s15 = scalar_lea.hbm %s4777_s9, 16 }
  0x49   : > { %p3370_p3 = scmp.ne.s32.totalorder %s4777_s9, %s3369_s15  ;;  %p3376_p8 = scmp.lt.u32.totalorder %s3369_s15, %s4777_s9 }
  0x4b   : > { %p3372_p12 = pnand %p3370_p3, %p3941_p6 }
  0x4d   : > { %p3373_p7 = pneg %p3372_p12 }
  0x4f   : > { %p3378_p9 = pnand %p3376_p8, %p3373_p7 }
  0x51   : > { %3381 = shalt.err (!%p3378_p9)
}
  0x52   : > { %s3382_s13 = scalar_lea.vmem %s3931_s16, 16  ;;  %s3389_s20 = scalar_lea.vmem %s3931_s16, 32 }
  0x53   : > { %p3383_p13 = scmp.ne.s32.totalorder %s3931_s16, %s3382_s13  ;;  %p3390_p10 = scmp.lt.s32.totalorder %s3931_s16, %s3931_s16 }
  0x54   : > { %p3391_p11 = scmp.lt.s32.totalorder %s3389_s20, %s3382_s13 }
  0x55   : > { %p3385_p4 = pnand %p3383_p13, %p3941_p6 }
  0x56   : > { %p3392_p1 = por %p3391_p11, %p3390_p10 }
  0x57   : > { %p3386_p5 = pneg %p3385_p4 }
  0x59   : > { %p3393_p0 = pnand %p3392_p1, %p3386_p5 }
  0x5b   : > { %3396 = shalt.err (!%p3393_p0)
}
  0x5c   : > { %3208 = dma.hbm_to_vmem [thread:$0]  (!%p3927_p2), %s4777_s9, 16, %s3931_s16, [#allocation19]  }
  0x5d   : > { %s52_s26 = sadd.s32 1, %s3767_s21  ;;  %s3983_s28 = sand.u32 1, %s3759_s19  }
  0x5e   : > { %p54_p3 = scmp.ge.s32.totalorder %s52_s26, 2  ;;  %s3986_s29 = sshll.u32 %s3983_s28, 2 }
  0x5f   : > { %s3989_s15 = sshll.u32 %s3767_s21, 6  ;;  %s3992_s25 = sand.u32 1, %s3771_s22  }
  0x60   : > { %s4823_s26 = smov (%p54_p3, %s52_s26), 0  ;;  %s4779_s1 = sld [smem:[#allocation39_spill]] }
  0x61   : > { %4778 = sst [smem:[#allocation38_spill]] %s4823_s26  ;;  %s56_s17 = ssub.s32 %s3767_s21, %s4823_s26 }
  0x62   : > { %p59_p12 = scmp.eq.s32.totalorder %s56_s17, 0  ;;  %s441_s23 = scalar_lea.vmem [#allocation6], %s3986_s29 }
  0x63   : > { %s449_s12 = sshll.u32 %s441_s23, 4  ;;  %s4780_s8 = sadd.s32 1, %s3759_s19  ;;  %s4005_s12 = int_to_ptr.vmem [resolvable:$true] %s449_s12 }
  0x64   : > { %s4010_s9 = scalar_select %p59_p12, %s3759_s19, %s4780_s8  }
  0x65   : > { %s4753_s22 = scalar_lea.sflag [#allocation7], %s3992_s25  ;;  %p4781_p8 = scmp.ne.s32.totalorder %s4773_s14, 0 }
  0x66   : > { %s4002_s20 = scalar_lea.hbm %s4779_s1, %s3989_s15  ;;  %s3402_s23 = scalar_lea.hbm %s4779_s1, 128 }
  0x67   : > { %s3397_s27 = scalar_lea.hbm %s4002_s20, 64  ;;  %p4017_p9 = pneg %p4781_p8 }
  0x68   : > { %p3398_p7 = scmp.ne.s32.totalorder %s4002_s20, %s3397_s27  ;;  %p3403_p5 = scmp.lt.u32.totalorder %s4002_s20, %s4779_s1 }
  0x69   : > { %p3404_p10 = scmp.lt.u32.totalorder %s3402_s23, %s3397_s27  ;;  %p3406_p1 = scmp.lt.u32.totalorder %s3397_s27, %s4002_s20 }
  0x6a   : > { %p3400_p13 = pnand %p4017_p9, %p3398_p7 }
  0x6b   : > { %p3405_p11 = por %p3404_p10, %p3403_p5 }
  0x6c   : > { %p3401_p4 = pneg %p3400_p13 }
  0x6d   : > { %p3407_p0 = por %p3406_p1, %p3405_p11 }
  0x6f   : > { %p3408_p3 = pnand %p3407_p0, %p3401_p4 }
  0x71   : > { %3411 = shalt.err (!%p3408_p3)
}
  0x72   : > { %s3412_s8 = scalar_lea.vmem %s4005_s12, 64  ;;  %s3775_s17 = smov [#allocation6]  }
  0x73   : > { %p3413_p12 = scmp.ne.s32.totalorder %s4005_s12, %s3412_s8  ;;  %s3417_s13 = sshll.u32 %s3775_s17, 4  ;;  %s3418_s13 = int_to_ptr.vmem [resolvable:$false] %s3417_s13 }
  0x74   : > { %s3419_s18 = scalar_lea.vmem %s3418_s13, 128  ;;  %p3420_p2 = scmp.lt.s32.totalorder %s4005_s12, %s3418_s13 }
  0x75   : > { %p3415_p7 = pnand %p3413_p12, %p4017_p9  ;;  %p3421_p6 = scmp.lt.s32.totalorder %s3419_s18, %s3412_s8 }
  0x77   : > { %p3416_p13 = pneg %p3415_p7  ;;  %p3422_p5 = por %p3421_p6, %p3420_p2 }
  0x79   : > { %p3423_p10 = pnand %p3422_p5, %p3416_p13 }
  0x7b   : > { %3426 = shalt.err (!%p3423_p10)
}
  0x7c   : > { %3218 = dma.hbm_to_vmem [thread:$0]  (!%p4781_p8), %s4002_s20, 64, %s4005_s12, %s4753_s22  }
  0x7d   : > { %s4783_s3 = sld [smem:[#allocation40_spill]]  ;;  %s479_s8 = scalar_lea.vmem [#allocation9], %s3986_s29 }
  0x7e   : > { %s487_s17 = sshll.u32 %s479_s8, 4  ;;  %s488_s17 = int_to_ptr.vmem [resolvable:$true] %s487_s17 }
  0x83   : > { %s4046_s23 = scalar_lea.hbm %s4783_s3, %s3989_s15  ;;  %s3432_s12 = scalar_lea.hbm %s4783_s3, 128 }
  0x84   : > { %s3427_s18 = scalar_lea.hbm %s4046_s23, 64  ;;  %p3433_p11 = scmp.lt.u32.totalorder %s4046_s23, %s4783_s3 }
  0x85   : > { %p3428_p2 = scmp.ne.s32.totalorder %s4046_s23, %s3427_s18  ;;  %p3434_p1 = scmp.lt.u32.totalorder %s3432_s12, %s3427_s18 }
  0x86   : > { %p3436_p3 = scmp.lt.u32.totalorder %s3427_s18, %s4046_s23 }
  0x87   : > { %p3430_p6 = pnand %p3428_p2, %p4017_p9  ;;  %p3435_p0 = por %p3434_p1, %p3433_p11 }
  0x89   : > { %p3431_p4 = pneg %p3430_p6  ;;  %p3437_p12 = por %p3436_p3, %p3435_p0 }
  0x8b   : > { %p3438_p7 = pnand %p3437_p12, %p3431_p4 }
  0x8d   : > { %3441 = shalt.err (!%p3438_p7)
}
  0x8e   : > { %s3442_s8 = scalar_lea.vmem %s488_s17, 64  ;;  %s3776_s22 = smov [#allocation9]  }
  0x8f   : > { %p3443_p13 = scmp.ne.s32.totalorder %s488_s17, %s3442_s8  ;;  %s3447_s13 = sshll.u32 %s3776_s22, 4  ;;  %s3448_s13 = int_to_ptr.vmem [resolvable:$false] %s3447_s13 }
  0x90   : > { %s3449_s1 = scalar_lea.vmem %s3448_s13, 128  ;;  %p3450_p2 = scmp.lt.s32.totalorder %s488_s17, %s3448_s13 }
  0x91   : > { %p3445_p5 = pnand %p3443_p13, %p4017_p9  ;;  %p3451_p6 = scmp.lt.s32.totalorder %s3449_s1, %s3442_s8 }
  0x93   : > { %p3446_p10 = pneg %p3445_p5  ;;  %p3452_p8 = por %p3451_p6, %p3450_p2 }
  0x95   : > { %p3453_p1 = pnand %p3452_p8, %p3446_p10 }
  0x97   : > { %3456 = shalt.err (!%p3453_p1)
}
  0x98   : > { %p4784_p11 = scmp.ne.s32.totalorder %s4773_s14, 0  ;;  %s4785_s18 = scalar_lea.sflag [#allocation10], %s3992_s25 }
  0x99   : > { %s4073_s22 = scalar_lea.hbm %s4725_s5, %s3989_s15  ;;  %s517_s13 = scalar_lea.vmem [#allocation12], %s3986_s29 }
  0x9a   : > { %3224 = dma.hbm_to_vmem [thread:$0]  (!%p4784_p11), %s4046_s23, 64, %s488_s17, %s4785_s18  }
  0x9b   : > { %s525_s27 = sshll.u32 %s517_s13, 4  ;;  %s3457_s8 = scalar_lea.hbm %s4073_s22, 64  ;;  %s526_s27 = int_to_ptr.vmem [resolvable:$true] %s525_s27 }
  0x9c   : > { %p3458_p8 = scmp.ne.s32.totalorder %s4073_s22, %s3457_s8  ;;  %s3462_s17 = scalar_lea.hbm %s4725_s5, 128 }
  0x9d   : > { %p3463_p3 = scmp.lt.u32.totalorder %s4073_s22, %s4725_s5  ;;  %p3464_p12 = scmp.lt.u32.totalorder %s3462_s17, %s3457_s8 }
  0x9e   : > { %p3460_p4 = pnand %p3458_p8, %p4017_p9  ;;  %p3466_p13 = scmp.lt.u32.totalorder %s3457_s8, %s4073_s22 }
  0x9f   : > { %p3465_p7 = por %p3464_p12, %p3463_p3 }
  0xa0   : > { %p3461_p0 = pneg %p3460_p4 }
  0xa1   : > { %p3467_p5 = por %p3466_p13, %p3465_p7 }
  0xa3   : > { %p3468_p10 = pnand %p3467_p5, %p3461_p0 }
  0xa5   : > { %3471 = shalt.err (!%p3468_p10)
}
  0xa6   : > { %s3472_s12 = scalar_lea.vmem %s526_s27, 64  ;;  %s3777_s13 = smov [#allocation12]  }
  0xa7   : > { %p3473_p2 = scmp.ne.s32.totalorder %s526_s27, %s3472_s12  ;;  %s3477_s26 = sshll.u32 %s3777_s13, 4  ;;  %s3478_s26 = int_to_ptr.vmem [resolvable:$false] %s3477_s26 }
  0xa8   : > { %s3479_s1 = scalar_lea.vmem %s3478_s26, 128  ;;  %p3480_p8 = scmp.lt.s32.totalorder %s526_s27, %s3478_s26 }
  0xa9   : > { %p3475_p6 = pnand %p3473_p2, %p4017_p9  ;;  %p3481_p4 = scmp.lt.s32.totalorder %s3479_s1, %s3472_s12 }
  0xab   : > { %p3476_p1 = pneg %p3475_p6  ;;  %p3482_p11 = por %p3481_p4, %p3480_p8 }
  0xad   : > { %p3483_p3 = pnand %p3482_p11, %p3476_p1 }
  0xaf   : > { %3486 = shalt.err (!%p3483_p3)
}
  0xb0   : > { %p4786_p12 = scmp.ne.s32.totalorder %s4773_s14, 0  ;;  %s4787_s8 = scalar_lea.sflag [#allocation13], %s3992_s25 }
  0xb1   : > { %s3778_s23 = smov [#allocation20]   ;;  %s3487_s13 = scalar_lea.hbm %s4730_s10, 16 }
  0xb2   : > { %3230 = dma.hbm_to_vmem [thread:$0]  (!%p4786_p12), %s4073_s22, 64, %s526_s27, %s4787_s8  }
  0xb3   : > { %s407_s17 = sshll.u32 %s3778_s23, 4  ;;  %p3488_p0 = scmp.ne.s32.totalorder %s4730_s10, %s3487_s13  ;;  %s408_s17 = int_to_ptr.vmem [resolvable:$true] %s407_s17 }
  0xb4   : > { %p4788_p11 = scmp.ne.s32.totalorder %s4776_s11, 0  ;;  %p3494_p5 = scmp.lt.u32.totalorder %s3487_s13, %s4730_s10 }
  0xb6   : > { %p3490_p7 = pnand %p3488_p0, %p4788_p11 }
  0xb8   : > { %p3491_p13 = pneg %p3490_p7 }
  0xba   : > { %p3496_p10 = pnand %p3494_p5, %p3491_p13 }
  0xbc   : > { %3499 = shalt.err (!%p3496_p10)
}
  0xbd   : > { %s3500_s22 = scalar_lea.vmem %s408_s17, 16  ;;  %s3507_s27 = scalar_lea.vmem %s408_s17, 32 }
  0xbe   : > { %p3501_p2 = scmp.ne.s32.totalorder %s408_s17, %s3500_s22  ;;  %p3508_p8 = scmp.lt.s32.totalorder %s408_s17, %s408_s17 }
  0xbf   : > { %p3509_p4 = scmp.lt.s32.totalorder %s3507_s27, %s3500_s22 }
  0xc0   : > { %p3503_p6 = pnand %p3501_p2, %p4788_p11 }
  0xc1   : > { %p3510_p3 = por %p3509_p4, %p3508_p8 }
  0xc2   : > { %p3504_p1 = pneg %p3503_p6 }
  0xc4   : > { %p3511_p12 = pnand %p3510_p3, %p3504_p1 }
  0xc6   : > { %3514 = shalt.err (!%p3511_p12)
}
  0xc7   : > { %p4789_p0 = scmp.ne.s32.totalorder %s4774_s24, 0  ;;  %s4118_s18 = scalar_lea.hbm %s4720_s0, %s3989_s15 }
  0xc8   : > { %s422_s20 = scalar_lea.vmem [#allocation3], %s3986_s29  ;;  %s419_s24 = scalar_lea.sflag [#allocation4], %s3983_s28 }
  0xc9   : > { %3211 = dma.hbm_to_vmem [thread:$0]  (!%p4789_p0), %s4730_s10, 16, %s408_s17, [#allocation19]  }
  0xca   : > { %s430_s13 = sshll.u32 %s422_s20, 4  ;;  %s3515_s26 = scalar_lea.hbm %s4118_s18, 64  ;;  %s431_s13 = int_to_ptr.vmem [resolvable:$true] %s430_s13 }
  0xcb   : > { %p3516_p12 = scmp.ne.s32.totalorder %s4118_s18, %s3515_s26  ;;  %s3520_s1 = scalar_lea.hbm %s4720_s0, 128 }
  0xcc   : > { %p3521_p13 = scmp.lt.u32.totalorder %s4118_s18, %s4720_s0  ;;  %p3522_p5 = scmp.lt.u32.totalorder %s3520_s1, %s3515_s26 }
  0xcd   : > { %p3518_p11 = pnand %p3516_p12, %p4017_p9  ;;  %p3524_p2 = scmp.lt.u32.totalorder %s3515_s26, %s4118_s18 }
  0xce   : > { %p3523_p10 = por %p3522_p5, %p3521_p13 }
  0xcf   : > { %p3519_p7 = pneg %p3518_p11 }
  0xd0   : > { %p3525_p6 = por %p3524_p2, %p3523_p10 }
  0xd2   : > { %p3526_p1 = pnand %p3525_p6, %p3519_p7 }
  0xd4   : > { %3529 = shalt.err (!%p3526_p1)
}
  0xd5   : > { %s3530_s3 = scalar_lea.vmem %s431_s13, 64  ;;  %s3779_s8 = smov [#allocation3]  }
  0xd6   : > { %p3531_p8 = scmp.ne.s32.totalorder %s431_s13, %s3530_s3  ;;  %s3535_s23 = sshll.u32 %s3779_s8, 4  ;;  %s3536_s23 = int_to_ptr.vmem [resolvable:$false] %s3535_s23 }
  0xd7   : > { %s3537_s11 = scalar_lea.vmem %s3536_s23, 128  ;;  %p3538_p0 = scmp.lt.s32.totalorder %s431_s13, %s3536_s23 }
  0xd8   : > { %p3533_p4 = pnand %p3531_p8, %p4017_p9  ;;  %p3539_p12 = scmp.lt.s32.totalorder %s3537_s11, %s3530_s3 }
  0xda   : > { %p3534_p3 = pneg %p3533_p4  ;;  %p3540_p11 = por %p3539_p12, %p3538_p0 }
  0xdc   : > { %p3541_p5 = pnand %p3540_p11, %p3534_p3 }
  0xde   : > { %3544 = shalt.err (!%p3541_p5)
}
  0xdf   : > { %p4790_p13 = scmp.ne.s32.totalorder %s4773_s14, 0  ;;  %s4143_s12 = scalar_lea.hbm %s4722_s2, %s3989_s15 }
  0xe0   : > { %s460_s17 = scalar_lea.vmem [#allocation8], %s3986_s29  ;;  %s3545_s22 = scalar_lea.hbm %s4143_s12, 64 }
  0xe1   : > { %3215 = dma.hbm_to_vmem [thread:$0]  (!%p4790_p13), %s4118_s18, 64, %s431_s13, %s419_s24  }
  0xe2   : > { %s468_s1 = sshll.u32 %s460_s17, 4  ;;  %p3546_p7 = scmp.ne.s32.totalorder %s4143_s12, %s3545_s22  ;;  %s469_s1 = int_to_ptr.vmem [resolvable:$true] %s468_s1 }
  0xe3   : > { %s3550_s18 = scalar_lea.hbm %s4722_s2, 128  ;;  %p3551_p6 = scmp.lt.u32.totalorder %s4143_s12, %s4722_s2 }
  0xe4   : > { %p3548_p10 = pnand %p3546_p7, %p4017_p9  ;;  %p3552_p1 = scmp.lt.u32.totalorder %s3550_s18, %s3545_s22 }
  0xe5   : > { %p3554_p4 = scmp.lt.u32.totalorder %s3545_s22, %s4143_s12 }
  0xe6   : > { %p3549_p2 = pneg %p3548_p10  ;;  %p3553_p8 = por %p3552_p1, %p3551_p6 }
  0xe8   : > { %p3555_p3 = por %p3554_p4, %p3553_p8 }
  0xea   : > { %p3556_p0 = pnand %p3555_p3, %p3549_p2 }
  0xec   : > { %3559 = shalt.err (!%p3556_p0)
}
  0xed   : > { %s3560_s8 = scalar_lea.vmem %s469_s1, 64  ;;  %s3780_s23 = smov [#allocation8]  }
  0xee   : > { %p3561_p12 = scmp.ne.s32.totalorder %s469_s1, %s3560_s8  ;;  %s3565_s11 = sshll.u32 %s3780_s23, 4  ;;  %s3566_s11 = int_to_ptr.vmem [resolvable:$false] %s3565_s11 }
  0xef   : > { %s3567_s20 = scalar_lea.vmem %s3566_s11, 128  ;;  %p3568_p7 = scmp.lt.s32.totalorder %s469_s1, %s3566_s11 }
  0xf0   : > { %p3563_p11 = pnand %p3561_p12, %p4017_p9  ;;  %p3569_p10 = scmp.lt.s32.totalorder %s3567_s20, %s3560_s8 }
  0xf2   : > { %p3564_p5 = pneg %p3563_p11  ;;  %p3570_p13 = por %p3569_p10, %p3568_p7 }
  0xf4   : > { %p3571_p1 = pnand %p3570_p13, %p3564_p5 }
  0xf6   : > { %3574 = shalt.err (!%p3571_p1)
}
  0xf7   : > { %p4791_p6 = scmp.ne.s32.totalorder %s4773_s14, 0  ;;  %s4792_s26 = scalar_lea.sflag [#allocation7], %s3992_s25 }
  0xf8   : > { %s4169_s27 = scalar_lea.hbm %s4724_s4, %s3989_s15  ;;  %s498_s3 = scalar_lea.vmem [#allocation11], %s3986_s29 }
  0xf9   : > { %3221 = dma.hbm_to_vmem [thread:$0]  (!%p4791_p6), %s4143_s12, 64, %s469_s1, %s4792_s26  }
  0xfa   : > { %s506_s18 = sshll.u32 %s498_s3, 4  ;;  %s2823_s13 = sshll.u32 %s3983_s28, 3  ;;  %s507_s18 = int_to_ptr.vmem [resolvable:$true] %s506_s18 }
  0xfb   : > { %s3575_s24 = scalar_lea.hbm %s4169_s27, 64  ;;  %s3580_s1 = scalar_lea.hbm %s4724_s4, 128 }
  0xfc   : > { %p3576_p13 = scmp.ne.s32.totalorder %s4169_s27, %s3575_s24  ;;  %p3581_p4 = scmp.lt.u32.totalorder %s4169_s27, %s4724_s4 }
  0xfd   : > { %p3582_p3 = scmp.lt.u32.totalorder %s3580_s1, %s3575_s24  ;;  %p3584_p12 = scmp.lt.u32.totalorder %s3575_s24, %s4169_s27 }
  0xfe   : > { %p3578_p2 = pnand %p3576_p13, %p4017_p9 }
  0xff   : > { %p3583_p0 = por %p3582_p3, %p3581_p4 }
 0x100   : > { %p3579_p8 = pneg %p3578_p2 }
 0x101   : > { %p3585_p11 = por %p3584_p12, %p3583_p0 }
 0x103   : > { %p3586_p5 = pnand %p3585_p11, %p3579_p8 }
 0x105   : > { %3589 = shalt.err (!%p3586_p5)
}
 0x106   : > { %s3590_s29 = scalar_lea.vmem %s507_s18, 64  ;;  %s3781_s11 = smov [#allocation11]  }
 0x107   : > { %p3591_p7 = scmp.ne.s32.totalorder %s507_s18, %s3590_s29  ;;  %s3595_s20 = sshll.u32 %s3781_s11, 4  ;;  %s3596_s20 = int_to_ptr.vmem [resolvable:$false] %s3595_s20 }
 0x108   : > { %s3597_s26 = scalar_lea.vmem %s3596_s20, 128  ;;  %p3598_p13 = scmp.lt.s32.totalorder %s507_s18, %s3596_s20 }
 0x109   : > { %p3593_p10 = pnand %p3591_p7, %p4017_p9  ;;  %p3599_p2 = scmp.lt.s32.totalorder %s3597_s26, %s3590_s29 }
 0x10b   : > { %p3594_p1 = pneg %p3593_p10  ;;  %p3600_p6 = por %p3599_p2, %p3598_p13 }
 0x10d   : > { %p3601_p3 = pnand %p3600_p6, %p3594_p1 }
 0x10f   : > { %3604 = shalt.err (!%p3601_p3)
}
 0x110   : > { %p4793_p4 = scmp.ne.s32.totalorder %s4773_s14, 0  ;;  %s4794_s17 = scalar_lea.sflag [#allocation10], %s3992_s25 }
 0x111   : > { %s2824_s22 = sshll.u32 %s3767_s21, 7  ;;  %s536_s12 = scalar_lea.vmem [#allocation14], %s2823_s13 }
 0x112   : > { %3227 = dma.hbm_to_vmem [thread:$0]  (!%p4793_p4), %s4169_s27, 64, %s507_s18, %s4794_s17  }
 0x113   : > { %s4198_s8 = scalar_lea.hbm %s4726_s6, %s2824_s22  ;;  %s544_s1 = sshll.u32 %s536_s12, 4  ;;  %s545_s1 = int_to_ptr.vmem [resolvable:$true] %s544_s1 }
 0x114   : > { %s3605_s23 = scalar_lea.hbm %s4198_s8, 128  ;;  %s3610_s15 = scalar_lea.hbm %s4726_s6, 256 }
 0x115   : > { %p3606_p6 = scmp.ne.s32.totalorder %s4198_s8, %s3605_s23  ;;  %p3611_p12 = scmp.lt.u32.totalorder %s4198_s8, %s4726_s6 }
 0x116   : > { %p3612_p11 = scmp.lt.u32.totalorder %s3610_s15, %s3605_s23  ;;  %p3614_p7 = scmp.lt.u32.totalorder %s3605_s23, %s4198_s8 }
 0x117   : > { %p3608_p8 = pnand %p3606_p6, %p4017_p9 }
 0x118   : > { %p3613_p5 = por %p3612_p11, %p3611_p12 }
 0x119   : > { %p3609_p0 = pneg %p3608_p8 }
 0x11a   : > { %p3615_p10 = por %p3614_p7, %p3613_p5 }
 0x11c   : > { %p3616_p1 = pnand %p3615_p10, %p3609_p0 }
 0x11e   : > { %3619 = shalt.err (!%p3616_p1)
}
 0x11f   : > { %s3620_s20 = scalar_lea.vmem %s545_s1, 128  ;;  %s3782_s26 = smov [#allocation14]  }
 0x120   : > { %p3621_p13 = scmp.ne.s32.totalorder %s545_s1, %s3620_s20  ;;  %s3625_s17 = sshll.u32 %s3782_s26, 4  ;;  %s3626_s17 = int_to_ptr.vmem [resolvable:$false] %s3625_s17 }
 0x121   : > { %s3627_s3 = scalar_lea.vmem %s3626_s17, 256  ;;  %p3628_p6 = scmp.lt.s32.totalorder %s545_s1, %s3626_s17 }
 0x122   : > { %p3623_p2 = pnand %p3621_p13, %p4017_p9  ;;  %p3629_p8 = scmp.lt.s32.totalorder %s3627_s3, %s3620_s20 }
 0x124   : > { %p3624_p3 = pneg %p3623_p2  ;;  %p3630_p4 = por %p3629_p8, %p3628_p6 }
 0x126   : > { %p3631_p11 = pnand %p3630_p4, %p3624_p3 }
 0x128   : > { %3634 = shalt.err (!%p3631_p11)
}
 0x129   : > { %p4795_p12 = scmp.ne.s32.totalorder %s4773_s14, 0  ;;  %s4796_s24 = scalar_lea.sflag [#allocation13], %s3992_s25 }
 0x12a   : > { %s4226_s27 = scalar_lea.hbm %s4727_s7, %s2824_s22  ;;  %s555_s18 = scalar_lea.vmem [#allocation15], %s2823_s13 }
 0x12b   : > { %3233 = dma.hbm_to_vmem [thread:$0]  (!%p4795_p12), %s4198_s8, 128, %s545_s1, %s4796_s24  }
 0x12c   : > { %s563_s15 = sshll.u32 %s555_s18, 4  ;;  %s552_s29 = scalar_lea.sflag [#allocation16], %s3992_s25  ;;  %s564_s15 = int_to_ptr.vmem [resolvable:$true] %s563_s15 }
 0x12d   : > { %s3635_s11 = scalar_lea.hbm %s4226_s27, 128  ;;  %s3640_s20 = scalar_lea.hbm %s4727_s7, 256 }
 0x12e   : > { %p3636_p4 = scmp.ne.s32.totalorder %s4226_s27, %s3635_s11  ;;  %p3641_p7 = scmp.lt.u32.totalorder %s4226_s27, %s4727_s7 }
 0x12f   : > { %p3642_p10 = scmp.lt.u32.totalorder %s3640_s20, %s3635_s11  ;;  %p3644_p13 = scmp.lt.u32.totalorder %s3635_s11, %s4226_s27 }
 0x130   : > { %p3638_p0 = pnand %p3636_p4, %p4017_p9 }
 0x131   : > { %p3643_p1 = por %p3642_p10, %p3641_p7 }
 0x132   : > { %p3639_p5 = pneg %p3638_p0 }
 0x133   : > { %p3645_p2 = por %p3644_p13, %p3643_p1 }
 0x135   : > { %p3646_p3 = pnand %p3645_p2, %p3639_p5 }
 0x137   : > { %3649 = shalt.err (!%p3646_p3)
}
 0x138   : > { %s3650_s28 = scalar_lea.vmem %s564_s15, 128  ;;  %s3783_s25 = smov [#allocation15]  }
 0x139   : > { %p3651_p6 = scmp.ne.s32.totalorder %s564_s15, %s3650_s28  ;;  %s3655_s13 = sshll.u32 %s3783_s25, 4  ;;  %s3656_s13 = int_to_ptr.vmem [resolvable:$false] %s3655_s13 }
 0x13a   : > { %s3657_s17 = scalar_lea.vmem %s3656_s13, 256  ;;  %p3658_p4 = scmp.lt.s32.totalorder %s564_s15, %s3656_s13 }
 0x13b   : > { %p3653_p8 = pnand %p3651_p6, %p4017_p9  ;;  %p3659_p0 = scmp.lt.s32.totalorder %s3657_s17, %s3650_s28 }
 0x13d   : > { %p3654_p11 = pneg %p3653_p8  ;;  %p3660_p12 = por %p3659_p0, %p3658_p4 }
 0x13f   : > { %p3661_p7 = pnand %p3660_p12, %p3654_p11 }
 0x141   : > { %3664 = shalt.err (!%p3661_p7)
}
 0x142   : > { %p4797_p10 = scmp.ne.s32.totalorder %s4773_s14, 0  ;;  %p4798_p5 = scmp.ne.s32.totalorder %s4772_s30, 0 }
 0x143   : > { %s4799_s3 = sld [smem:[#allocation31_spill]] (!%p4798_p5)  ;;  %s4800_s16 = sld [smem:[#allocation35_spill]] (!%p4798_p5) }
 0x144   : > { %3236 = dma.hbm_to_vmem [thread:$0]  (!%p4797_p10), %s4226_s27, 128, %s564_s15, %s552_s29  }
 0x145   : > { %572 = sbr.rel (%p4798_p5) target bundleno = 3269 (0xcc5), region = 64 }
 0x149   : > { %s4251_s24 = sand.u32 (!%p4798_p5), 1, %s4799_s3   ;;  %p4801_p9 = scmp.ne.s32.totalorder (!%p4798_p5), %s4800_s16, 0 }
 0x14a   : > { %s4254_s12 = sshll.u32 (!%p4798_p5), %s4251_s24, 2  ;;  %s575_s23 = scalar_lea.sflag (!%p4798_p5), [#allocation4], %s4251_s24 }
 0x14b   : > { %s578_s18 = scalar_lea.vmem (!%p4798_p5), [#allocation3], %s4254_s12 }
 0x14c   : > { %3718 = dma.done.wait (%p4801_p9), %s575_s23, 64  }
 0x14d   : > { %3720 = vsyncadd (%p4801_p9), %s575_s23, 4294967232  ;;  %s4802_s14 = sld [smem:[#allocation34_spill]]  ;;  %s587_s15 = scalar_lea.vmem [#allocation6], %s4254_s12 }
 0x153   : > { %s583_s30 = sand.u32 1, %s4802_s14  }
 0x154   : > { %s584_s27 = scalar_lea.sflag [#allocation7], %s583_s30 }
 0x155   : > { %3722 = dma.done.wait (%p4801_p9), %s584_s27, 128  }
 0x156   : > { %3724 = vsyncadd (%p4801_p9), %s584_s27, 4294967168  ;;  %s596_s29 = scalar_lea.vmem [#allocation8], %s4254_s12  ;;  %s602_s11 = scalar_lea.sflag [#allocation10], %s583_s30 }
 0x157   : > { %s605_s8 = scalar_lea.vmem [#allocation9], %s4254_s12 }
 0x158   : > { %3726 = dma.done.wait (%p4801_p9), %s602_s11, 128  }
 0x159   : > { %3728 = vsyncadd (%p4801_p9), %s602_s11, 4294967168  ;;  %s614_s1 = scalar_lea.vmem [#allocation11], %s4254_s12  ;;  %s620_s20 = scalar_lea.sflag [#allocation13], %s583_s30 }
 0x15a   : > { %s623_s22 = scalar_lea.vmem [#allocation12], %s4254_s12 }
 0x15b   : > { %3730 = dma.done.wait (%p4801_p9), %s620_s20, 192  }
 0x15c   : > { %3732 = vsyncadd (%p4801_p9), %s620_s20, 4294967104  ;;  %s2834_s26 = sshll.u32 %s4251_s24, 3  ;;  %s638_s25 = scalar_lea.sflag [#allocation16], %s583_s30 }
 0x15d   : > { %s632_s28 = scalar_lea.vmem [#allocation14], %s2834_s26  ;;  %s641_s13 = scalar_lea.vmem [#allocation15], %s2834_s26 }
 0x15e   : > { %3734 = dma.done.wait (%p4801_p9), %s638_s25, 128  }
 0x15f   : > { %3736 = vsyncadd (%p4801_p9), %s638_s25, 4294967168  ;;  %p4803_p12 = scmp.eq.s32.totalorder %s4802_s14, 0 }
 0x161   : > { %3738 = dma.done.wait (%p4803_p12), [#allocation16], 16   ;;  %p4804_p1 = pmov %p4803_p12 }
 0x163   : > { %3740 = vsyncadd (%p4804_p1), [#allocation16], 4294967280  ;;  %p4805_p13 = pmov %p4804_p1 }
 0x164   : > { %p4806_p2 = pmov %p4804_p1 }
 0x165   : > { %3742 = dma.done.wait (%p4805_p13), [#allocation19], 32  }
 0x166   : > { %3744 = vsyncadd (%p4806_p2), [#allocation19], 4294967264  ;;  %vm732_vm0 = vcmask 130048   ;;  %v3784_v0 = vmov 0.0   ;;  %vm3785_vm1 = vmmov 0   ;;  %v4307_v1 = vld [vmem:[%s632_s28] sm:$0xff]  ;;  %v758_v28 = vlaneseq }
 0x167   : > { %2944 = vmatprep.subr.bf16.mxu0 %v3784_v0  ;;  %733 = vst.msk [vmem:[#allocation2] sm:$0xff] %vm732_vm0, %v3784_v0  ;;  %734 = vst.msk [vmem:[#allocation2 + $0x8] sm:$0xff] %vm732_vm0, %v3784_v0  ;;  %2946 = vmatprep.mubr.msk.bf16.mxu0 %vm3785_vm1, %v3784_v0  ;;  %v755_v2 = vsub.f32 0.0, %v4307_v1  ;;  %v750_v3 = vld [vmem:[%s641_s13] sm:$0xff]  ;;  %v751_v7 = vmul.f32 1.442695, %v4307_v1 }
 0x168   : > { %735 = vst.msk [vmem:[#allocation2 + $0x10] sm:$0xff] %vm732_vm0, %v3784_v0  ;;  %736 = vst.msk [vmem:[#allocation2 + $0x18] sm:$0xff] %vm732_vm0, %v3784_v0  ;;  %2950 = vmatprep.subr.bf16.mxu1 %v3784_v0  ;;  %2952 = vmatprep.mubr.msk.bf16.mxu1 %vm3785_vm1, %v3784_v0  ;;  %v753_v5 = vmul.f32 1.442695, %v750_v3  ;;  %v4312_v6 = vld [vmem:[%s614_s1] sm:$0xf] }
 0x169   : > { %v756_v4 = vmul.f32 1.442695, %v755_v2  ;;  %v746_v8 = vunpack.c.l.bf16 %v4312_v6  ;;  %v743_v9 = vld [vmem:[%s605_s8] sm:$0xf]  ;;  %v4326_v17 = vld [vmem:[%s578_s18] sm:$0xf] }
 0x16a   : > { %v744_v12 = vunpack.c.l.bf16 %v743_v9  ;;  %v738_v19 = vunpack.c.l.bf16 %v4326_v17  ;;  %v739_v23 = vld [vmem:[%s587_s15] sm:$0xf]  ;;  %v4367_v29 = vshrl.u32 %v758_v28, 7  ;;  %v4369_v30 = vand.u32 127, %v758_v28  ;;  %v4392_v51 = vld [vmem:[%s596_s29] sm:$0xf] }
 0x16b   : > { %3329 = vpow2.f32 %v756_v4  ;;  %v4350_v24 = vunpack.c.l.bf16 %v739_v23  ;;  %vm974_vm3 = vcmask 1043456   ;;  %vm970_vm4 = vcmask 64512   ;;  %s3786_s17 = smov 112   ;;  %s3787_s3 = smov 16  }
 0x16c   : > { %3331 = vpow2.f32 %v753_v5  ;;  %vm772_vm2 = vcmp.lt.s32.totalorder %v4369_v30, %v4367_v29  ;;  %vm774_vm5 = vcmp.eq.s32.totalorder %v4367_v29, %v4369_v30  ;;  %v2848_v56 = vcombine.low %v4392_v51, %v4392_v51  ;;  %s4807_s16 = sld [smem:[#allocation32_spill]]  ;;  %s4808_s23 = sld [smem:[#allocation36_spill]] }
 0x16d   : > { %3333 = vpow2.f32 %v751_v7  ;;  %v4388_v50 = vsel %vm774_vm5, 1.0, %v3784_v0  ;;  %vm773_vm6 = vcmp.le.s32.totalorder %v4369_v30, %v4367_v29  ;;  %s726_s14 = scalar_lea.vmem [#allocation21], %s4254_s12  ;;  %vm2520_vm8 = vcmask 257024   ;;  %s4809_s29 = sld [smem:[#allocation43_spill]] }
 0x16e   : > { %v4400_v61 = vsel %vm974_vm3, %v2848_v56, 0  ;;  %v4412_v63 = vld [vmem:[#allocation2] sm:$0xff]  ;;  %v4414_v2 = vld [vmem:[#allocation2 + $0x8] sm:$0xff]  ;;  %s2537_s30 = sshll.u32 %s726_s14, 4  ;;  %s2523_s8 = scalar_lea.sflag [#allocation5], %s4251_s24  ;;  %s4673_s30 = int_to_ptr.vmem [resolvable:$true] %s2537_s30 }
 0x16f   : > { %v4420_v4 = vpack.c.bf16 %v4414_v2, %v4412_v63  ;;  %s3665_s1 = scalar_lea.vmem %s4673_s30, 64  ;;  %s3788_s12 = smov [#allocation21]  }
 0x170   : > { %p3666_p3 = scmp.ne.s32.totalorder %s4673_s30, %s3665_s1  ;;  %s3669_s20 = sshll.u32 %s3788_s12, 4  ;;  %s3670_s20 = int_to_ptr.vmem [resolvable:$false] %s3669_s20 }
 0x171   : > { %p3672_p4 = scmp.lt.s32.totalorder %s4673_s30, %s3670_s20 }
 0x172   : > { %s2877_s18 = sshll.u32 %s4807_s16, 6  ;;  %p4810_p6 = scmp.ne.s32.totalorder %s4808_s23, 0 }
 0x173   : > { %s4671_s11 = scalar_lea.hbm %s4809_s29, %s2877_s18 }
 0x174   : > { %p3667_p8 = pnand %p3666_p3, %p4810_p6 }
 0x175   : > { %v3330_v10 = vpop.eup %3329 }
 0x176   : > { %v781_v11 = vmul.f32 %v3330_v10, %v746_v8  ;;  %v3332_v13 = vpop.eup %3331  ;;  %v782_v25 = vmul.f32 %v3330_v10, %v4350_v24  ;;  %p3668_p11 = pneg %p3667_p8 }
 0x177   : > { %v780_v16 = vmul.f32 %v3332_v13, %v744_v12  ;;  %v4332_v20 = vpop.eup %3333 }
 0x178   : > { %v4320_v14 = vpack.c.bf16 %v781_v11, %v781_v11  ;;  %v779_v21 = vmul.f32 %v4332_v20, %v738_v19  ;;  %v4353_v26 = vpack.c.bf16 %v782_v25, %v782_v25 }
 0x179   : > { %v4329_v18 = vpack.c.bf16 %v780_v16, %v780_v16 }
 0x17a   : > { %v794_v15 = vsel %vm732_vm0, %v4320_v14, 0  ;;  %v4342_v22 = vpack.c.bf16 %v779_v21, %v779_v21  ;;  %v839_v27 = vsel %vm732_vm0, %v4353_v26, 0  ;;  %1650 = vrot.lane.b32.xlu0 %v4320_v14, %s3786_s17 }
 0x17b   : > { %2945 = vmatpush3.bf16.xpose.msra.mxu0 %v794_v15  ;;  %2951 = vmatpush3.bf16.xpose.msra.mxu1 %v839_v27 }
 0x17c   : > { %2956 = vmatprep.subr.bf16.mxu0 %v3784_v0  ;;  %2962 = vmatprep.subr.bf16.mxu1 %v3784_v0 }
 0x17d   : > { %1647 = vrot.lane.b32.xlu1 %v4329_v18, %s3786_s17 }
 0x181   : > { %1747 = vrot.lane.b32.xlu1 %v4342_v22, %s3786_s17 }
 0x182   : > { %2947 = vmatmul.mubr.msk.bf16.vlgmr.msra.gmra.mrb[0].mxu0 %vm732_vm0, %v4329_v18  ;;  %2953 = vmatmul.mubr.msk.bf16.vlgmr.msra.gmra.mrb[0].mxu1 %vm732_vm0, %v4329_v18 }
 0x183   : > { %2957 = vmatpush3.bf16.xpose.msra.mxu0 %v794_v15  ;;  %2958 = vmatprep.mubr.msk.bf16.mxu0 %vm3785_vm1, %v3784_v0 }
 0x184   : > { %2968 = vmatprep.subr.bf16.mxu0 %v3784_v0  ;;  %2963 = vmatpush3.bf16.xpose.msra.mxu1 %v839_v27 }
 0x185   : > { %2964 = vmatprep.mubr.msk.bf16.mxu1 %vm3785_vm1, %v3784_v0  ;;  %2974 = vmatprep.subr.bf16.mxu1 %v3784_v0 }
 0x186   : > { %1700 = vrot.lane.b32.xlu1 %v4353_v26, %s3786_s17 }
 0x18a   : > { %2959 = vmatmul.mubr.msk.bf16.vlgmr.msra.gmra.mrb[4].mxu0 %vm732_vm0, %v4342_v22  ;;  %2024 = vrot.lane.b32.xlu1 %v2848_v56, %s3786_s17 }
 0x18b   : > { %2970 = vmatprep.mubr.msk.bf16.mxu0 %vm3785_vm1, %v3784_v0  ;;  %2965 = vmatmul.mubr.msk.bf16.vlgmr.msra.gmra.mrb[4].mxu1 %vm732_vm0, %v4342_v22 }
 0x18c   : > { %2976 = vmatprep.mubr.msk.bf16.mxu1 %vm3785_vm1, %v3784_v0 }
 0x1ec   : > { %v1651_v6 = vpop.permute.xlu0 %1650 }
 0x255   : > { %v830_v31 = vpop.f32.mrb[0].mxu0  ;;  %v875_v42 = vpop.f32.mrb[0].mxu1 }
 0x256   : > { %v836_v32 = vsel %vm772_vm2, %v830_v31, 0.0  ;;  %v2948_v33 = vpop.f32.mrb[1].mxu0  ;;  %v2954_v43 = vpop.f32.mrb[1].mxu1  ;;  %v881_v62 = vsel %vm772_vm2, %v875_v42, 0.0 }
 0x257   : > { %v969_v34 = vpack.c.bf16 %v836_v32, %v836_v32  ;;  %v833_v35 = vpop.f32.mrb[2].mxu0  ;;  %v878_v44 = vpop.f32.mrb[2].mxu1  ;;  %v968_v53 = vadd.f32 %v836_v32, %v4388_v50  ;;  %v1158_v3 = vpack.c.bf16 %v881_v62, %v881_v62 }
 0x258   : > { %v2949_v36 = vpop.f32.mrb[3].mxu0  ;;  %v2955_v45 = vpop.f32.mrb[3].mxu1  ;;  %v760_v35 = vsub.s32 7, %v4367_v29 }
 0x259   : > { %v975_v37 = vsel %vm974_vm3, %v969_v34, 0  ;;  %v1017_v60 = vpack.c.bf16 %v968_v53, %v968_v53 }
 0x25a   : > { %2969 = vmatpush3.bf16.msra.mxu0 %v975_v37  ;;  %v761_v36 = vrot.slane %v4307_v1, %v760_v35 }
 0x25b   : > { %2980 = vmatprep.subr.bf16.mxu0 %v3784_v0 }
 0x25c   : > { %v762_v37 = vsub.f32 %v761_v36, %v4307_v1 }
 0x25d   : > { %2971 = vmatmul.mubr.msk.bf16.vlgmr.msra.gmra.mrb[8].mxu0 %vm970_vm4, %v969_v34  ;;  %v4379_v38 = vpop.f32.mrb[4].mxu0 }
 0x25e   : > { %v2960_v39 = vpop.f32.mrb[5].mxu0  ;;  %2982 = vmatprep.mubr.msk.bf16.mxu0 %vm3785_vm1, %v3784_v0  ;;  %v4383_v46 = vpop.f32.mrb[4].mxu1 }
 0x25f   : > { %v923_v40 = vpop.f32.mrb[6].mxu0  ;;  %v2966_v47 = vpop.f32.mrb[5].mxu1  ;;  %v763_v39 = vmul.f32 1.442695, %v762_v37 }
 0x260   : > { %v2961_v41 = vpop.f32.mrb[7].mxu0  ;;  %v964_v48 = vpop.f32.mrb[6].mxu1 }
 0x261   : > { %v2967_v49 = vpop.f32.mrb[7].mxu1  ;;  %3335 = vpow2.f32 %v763_v39 }
 0x26b   : > { %v3336_v14 = vpop.eup %3335 }
 0x26c   : > { %v784_v40 = vmul.f32 %v3336_v14, %v4350_v24 }
 0x330   : > { %v1011_v52 = vpop.f32.mrb[8].mxu0 }
 0x331   : > { %v1018_v54 = vpack.c.bf16 %v1011_v52, %v1011_v52  ;;  %v2972_v55 = vpop.f32.mrb[9].mxu0 }
 0x332   : > { %v1014_v57 = vpop.f32.mrb[10].mxu0  ;;  %v926_v55 = vsel %vm773_vm6, %v4379_v38, 0.0 }
 0x333   : > { %v1023_v58 = vsel %vm974_vm3, %v1018_v54, 0  ;;  %v2973_v59 = vpop.f32.mrb[11].mxu0 }
 0x334   : > { %2975 = vmatpush3.bf16.msra.mxu1 %v1023_v58  ;;  %2981 = vmatpush3.bf16.msra.mxu0 %v1023_v58  ;;  %v1294_v59 = vpack.c.bf16 %v926_v55, %v926_v55 }
 0x335   : > { %2992 = vmatprep.subr.bf16.mxu0 %v3784_v0  ;;  %2986 = vmatprep.subr.bf16.mxu1 %v3784_v0 }
 0x337   : > { %2977 = vmatmul.mubr.msk.bf16.vlgmr.msra.gmra.mrb[8].mxu1 %vm970_vm4, %v1017_v60  ;;  %2983 = vmatmul.mubr.msk.bf16.vlgmr.msra.gmra.mrb[12].mxu0 %vm970_vm4, %v1018_v54 }
 0x338   : > { %2993 = vmatpush3.bf16.msra.mxu0 %v4400_v61  ;;  %2994 = vmatprep.mubr.msk.bf16.mxu0 %vm3785_vm1, %v3784_v0 }
 0x339   : > { %2998 = vmatprep.subr.bf16.mxu0 %v3784_v0  ;;  %2988 = vmatprep.mubr.msk.bf16.mxu1 %vm3785_vm1, %v3784_v0 }
 0x33f   : > { %2995 = vmatmul.mubr.msk.bf16.vlgmr.msra.gmra.mrb[16].mxu0 %vm970_vm4, %v1158_v3  ;;  %v4479_v3 = vpop.permute.xlu1 %1647 }
 0x340   : > { %2999 = vmatpush3.bf16.msra.mxu0 %v4420_v4  ;;  %3000 = vmatprep.mubr.msk.bf16.mxu0 %vm3785_vm1, %v3784_v0 }
 0x341   : > { %3028 = vmatprep.subr.bf16.mxu0 %v3784_v0 }
 0x34b   : > { %3001 = vmatmul.mubr.msk.bf16.vlgmr.msra.gmra.mrb[16].mxu0 %vm732_vm0, %v4329_v18  ;;  %v783_v18 = vmul.f32 %v3336_v14, %v746_v8 }
 0x34c   : > { %3030 = vmatprep.mubr.msk.bf16.mxu0 %vm3785_vm1, %v3784_v0 }
 0x34d   : > { %2308 = vrot.lane.b32.xlu1 %v783_v18, %s3786_s17  ;;  %v3304_v1 = vpack.i.bf16 %v784_v40, %v783_v18 }
 0x34f   : > { %3305 = vxpose.xlu0.b32.start.end [1/1] (short) (narrow) %v3304_v1, 16 }
 0x351   : > { %2391 = vrot.lane.b32.xlu1 %v784_v40, %s3786_s17 }
 0x3cf   : > { %v3306_v8 = vpop.trf.xlu0 }
 0x3d0   : > { %v3307_v49 = vunpack.i.l.bf16 %v3306_v8  ;;  %v3310_v38 = vunpack.i.h.bf16 %v3306_v8 }
 0x3d3   : > { %v3311_v47 = vpop.trf.xlu0 }
 0x3d4   : > { %v3312_v52 = vunpack.i.l.bf16 %v3311_v47  ;;  %v3315_v62 = vunpack.i.h.bf16 %v3311_v47 }
 0x3d6   : > { %v1473_v60 = vpack.c.bf16 %v3312_v52, %v3307_v49 }
 0x40a   : > { %v1059_v5 = vpop.f32.mrb[8].mxu1  ;;  %v1102_v7 = vpop.f32.mrb[12].mxu0 }
 0x40b   : > { %v1065_v9 = vadd.f32 %v1059_v5, %v968_v53  ;;  %v1109_v10 = vpack.c.bf16 %v1102_v7, %v1102_v7  ;;  %v2978_v11 = vpop.f32.mrb[9].mxu1  ;;  %v2984_v12 = vpop.f32.mrb[13].mxu0  ;;  %v1552_v5 = vpack.c.bf16 %v3315_v62, %v3310_v38  ;;  %v1656_v7 = vsel %vm732_vm0, %v1651_v6, 0 }
 0x40c   : > { %v1062_v13 = vpop.f32.mrb[10].mxu1  ;;  %v1105_v15 = vpop.f32.mrb[14].mxu0 }
 0x40d   : > { %v1114_v16 = vsel %vm974_vm3, %v1109_v10, 0  ;;  %v2979_v21 = vpop.f32.mrb[11].mxu1  ;;  %v2985_v23 = vpop.f32.mrb[15].mxu0  ;;  %v1108_v25 = vpack.c.bf16 %v1065_v9, %v1065_v9 }
 0x40e   : > { %2987 = vmatpush3.bf16.msra.mxu1 %v1114_v16 }
 0x40f   : > { %3004 = vmatprep.subr.bf16.mxu1 %v3784_v0 }
 0x411   : > { %2989 = vmatmul.mubr.msk.bf16.vlgmr.msra.gmra.mrb[12].mxu1 %vm970_vm4, %v1108_v25 }
 0x412   : > { %3006 = vmatprep.mubr.msk.bf16.mxu1 %vm3785_vm1, %v3784_v0 }
 0x41e   : > { %v1240_v27 = vpop.f32.mrb[16].mxu0 }
 0x41f   : > { %v1247_v28 = vpack.c.bf16 %v1240_v27, %v1240_v27  ;;  %v3002_v31 = vpop.f32.mrb[17].mxu0 }
 0x420   : > { %v1243_v32 = vpop.f32.mrb[18].mxu0 }
 0x421   : > { %v1252_v33 = vsel %vm974_vm3, %v1247_v28, 0  ;;  %v3003_v34 = vpop.f32.mrb[19].mxu0 }
 0x422   : > { %3005 = vmatpush3.bf16.msra.mxu1 %v1252_v33 }
 0x423   : > { %3010 = vmatprep.subr.bf16.mxu1 %v3784_v0 }
 0x4e4   : > { %v1150_v41 = vpop.f32.mrb[12].mxu1 }
 0x4e5   : > { %v1156_v42 = vadd.f32 %v1150_v41, %v1065_v9  ;;  %v2990_v43 = vpop.f32.mrb[13].mxu1 }
 0x4e6   : > { %v1153_v44 = vpop.f32.mrb[14].mxu1 }
 0x4e7   : > { %v1246_v45 = vpack.c.bf16 %v1156_v42, %v1156_v42  ;;  %v2991_v26 = vpop.f32.mrb[15].mxu1 }
 0x4e9   : > { %3007 = vmatmul.mubr.msk.bf16.vlgmr.msra.gmra.mrb[16].mxu1 %vm970_vm4, %v1246_v45 }
 0x4ea   : > { %3012 = vmatprep.mubr.msk.bf16.mxu1 %vm3785_vm1, %v3784_v0 }
 0x5bc   : > { %v1288_v48 = vpop.f32.mrb[16].mxu1 }
 0x5bd   : > { %v1295_v53 = vpack.c.bf16 %v1288_v48, %v1288_v48  ;;  %v3008_v54 = vpop.f32.mrb[17].mxu1 }
 0x5be   : > { %v1291_v56 = vpop.f32.mrb[18].mxu1 }
 0x5bf   : > { %v1300_v57 = vsel %vm974_vm3, %v1295_v53, 0  ;;  %v3009_v58 = vpop.f32.mrb[19].mxu1  ;;  %v4552_v56 = vld [vmem:[#allocation2 + $0x10] sm:$0xff] }
 0x5c0   : > { %3011 = vmatpush3.bf16.msra.mxu1 %v1300_v57  ;;  %3029 = vmatpush3.bf16.msra.mxu0 %v1300_v57  ;;  %v4554_v57 = vld [vmem:[#allocation2 + $0x18] sm:$0xff] }
 0x5c1   : > { %3034 = vmatprep.subr.bf16.mxu0 %v3784_v0  ;;  %3016 = vmatprep.subr.bf16.mxu1 %v3784_v0 }
 0x5c3   : > { %3013 = vmatmul.mubr.msk.bf16.vlgmr.msra.gmra.mrb[20].mxu1 %vm970_vm4, %v1294_v59  ;;  %3031 = vmatmul.mubr.msk.bf16.vlgmr.msra.gmra.mrb[20].mxu0 %vm970_vm4, %v1473_v60  ;;  %v4563_v59 = vpack.c.bf16 %v4554_v57, %v4552_v56 }
 0x5c4   : > { %3035 = vmatpush3.bf16.msra.mxu0 %v4400_v61  ;;  %3017 = vmatpush3.bf16.msra.mxu1 %v4420_v4  ;;  %v4486_v4 = vpop.permute.xlu1 %1747 }
 0x5c5   : > { %3018 = vmatprep.mubr.msk.bf16.mxu1 %vm3785_vm1, %v3784_v0  ;;  %3036 = vmatprep.mubr.msk.bf16.mxu0 %vm3785_vm1, %v3784_v0 }
 0x5c6   : > { %3040 = vmatprep.subr.bf16.mxu0 %v3784_v0  ;;  %3022 = vmatprep.subr.bf16.mxu1 %v3784_v0 }
 0x5c8   : > { %v1701_v9 = vpop.permute.xlu1 %1700 }
 0x5c9   : > { %v1703_v10 = vsel %vm732_vm0, %v1701_v9, 0 }
 0x5cc   : > { %v2025_v49 = vpop.permute.xlu1 %2024 }
 0x5cd   : > { %v4542_v55 = vsel %vm974_vm3, %v2025_v49, 0 }
 0x5cf   : > { %3019 = vmatmul.mubr.msk.bf16.vlgmr.msra.gmra.mrb[20].mxu1 %vm732_vm0, %v4342_v22  ;;  %3037 = vmatmul.mubr.msk.bf16.vlgmr.msra.gmra.mrb[20].mxu0 %vm970_vm4, %v1552_v5  ;;  %v967_v22 = vsel %vm773_vm6, %v4383_v46, 0.0 }
 0x5d0   : > { %3041 = vmatpush3.bf16.xpose.msra.mxu0 %v1656_v7  ;;  %3023 = vmatpush3.bf16.msra.mxu1 %v4400_v61  ;;  %v1382_v61 = vpack.c.bf16 %v967_v22, %v967_v22 }
 0x5d1   : > { %3042 = vmatprep.mubr.msk.bf16.mxu0 %vm3785_vm1, %v3784_v0  ;;  %3052 = vmatprep.subr.bf16.mxu0 %v3784_v0 }
 0x5d2   : > { %3024 = vmatprep.mubr.msk.bf16.mxu1 %vm3785_vm1, %v3784_v0  ;;  %3046 = vmatprep.subr.bf16.mxu1 %v3784_v0 }
 0x5d7   : > { %3043 = vmatmul.mubr.msk.bf16.vlgmr.msra.gmra.mrb[24].mxu0 %vm732_vm0, %v4479_v3 }
 0x5d8   : > { %3053 = vmatpush3.bf16.xpose.msra.mxu0 %v1656_v7  ;;  %3054 = vmatprep.mubr.msk.bf16.mxu0 %vm3785_vm1, %v3784_v0 }
 0x5d9   : > { %3064 = vmatprep.subr.bf16.mxu0 %v3784_v0 }
 0x5db   : > { %3025 = vmatmul.mubr.msk.bf16.vlgmr.msra.gmra.mrb[20].mxu1 %vm970_vm4, %v1382_v61 }
 0x5dc   : > { %3047 = vmatpush3.bf16.xpose.msra.mxu1 %v1703_v10  ;;  %3048 = vmatprep.mubr.msk.bf16.mxu1 %vm3785_vm1, %v3784_v0 }
 0x5dd   : > { %3058 = vmatprep.subr.bf16.mxu1 %v3784_v0 }
 0x5df   : > { %3055 = vmatmul.mubr.msk.bf16.vlgmr.msra.gmra.mrb[28].mxu0 %vm732_vm0, %v4486_v4 }
 0x5e0   : > { %3066 = vmatprep.mubr.msk.bf16.mxu0 %vm3785_vm1, %v3784_v0 }
 0x5e3   : > { %3049 = vmatmul.mubr.msk.bf16.vlgmr.msra.gmra.mrb[24].mxu1 %vm732_vm0, %v4479_v3 }
 0x5e4   : > { %3059 = vmatpush3.bf16.xpose.msra.mxu1 %v1703_v10  ;;  %3060 = vmatprep.mubr.msk.bf16.mxu1 %vm3785_vm1, %v3784_v0 }
 0x5e5   : > { %3070 = vmatprep.subr.bf16.mxu1 %v3784_v0 }
 0x5eb   : > { %3061 = vmatmul.mubr.msk.bf16.vlgmr.msra.gmra.mrb[28].mxu1 %vm732_vm0, %v4486_v4 }
 0x5ec   : > { %3072 = vmatprep.mubr.msk.bf16.mxu1 %vm3785_vm1, %v3784_v0 }
 0x6a2   : > { %v4521_v46 = vpop.f32.mrb[20].mxu0 }
 0x6a3   : > { %v3038_v11 = vpop.f32.mrb[21].mxu0 }
 0x6a4   : > { %v4523_v12 = vpop.f32.mrb[22].mxu0 }
 0x6a5   : > { %v3039_v13 = vpop.f32.mrb[23].mxu0 }
 0x6aa   : > { %v1692_v15 = vpop.f32.mrb[24].mxu0 }
 0x6ab   : > { %v1698_v16 = vsel %vm772_vm2, %v1692_v15, 0.0  ;;  %v3044_v21 = vpop.f32.mrb[25].mxu0 }
 0x6ac   : > { %v1835_v23 = vpack.c.bf16 %v1698_v16, %v1698_v16  ;;  %v1695_v25 = vpop.f32.mrb[26].mxu0  ;;  %v1834_v6 = vadd.f32 %v1698_v16, %v4388_v50 }
 0x6ad   : > { %v3045_v27 = vpop.f32.mrb[27].mxu0 }
 0x6ae   : > { %v4528_v28 = vpop.f32.mrb[20].mxu1  ;;  %v1839_v31 = vsel %vm974_vm3, %v1835_v23, 0  ;;  %v1881_v54 = vpack.c.bf16 %v1834_v6, %v1834_v6 }
 0x6af   : > { %v3026_v32 = vpop.f32.mrb[21].mxu1  ;;  %3065 = vmatpush3.bf16.msra.mxu0 %v1839_v31 }
 0x6b0   : > { %v1423_v33 = vpop.f32.mrb[22].mxu1  ;;  %3076 = vmatprep.subr.bf16.mxu0 %v3784_v0  ;;  %v2309_v32 = vpop.permute.xlu1 %2308 }
 0x6b1   : > { %v3027_v34 = vpop.f32.mrb[23].mxu1 }
 0x6b2   : > { %3067 = vmatmul.mubr.msk.bf16.vlgmr.msra.gmra.mrb[32].mxu0 %vm970_vm4, %v1835_v23  ;;  %v4533_v36 = vpop.f32.mrb[28].mxu0 }
 0x6b3   : > { %v3056_v37 = vpop.f32.mrb[29].mxu0  ;;  %3078 = vmatprep.mubr.msk.bf16.mxu0 %vm3785_vm1, %v3784_v0 }
 0x6b4   : > { %v1789_v39 = vpop.f32.mrb[30].mxu0  ;;  %v2392_v33 = vpop.permute.xlu1 %2391 }
 0x6b5   : > { %v3057_v14 = vpop.f32.mrb[31].mxu0  ;;  %v3316_v34 = vpack.i.bf16 %v2392_v33, %v2309_v32 }
 0x6b6   : > { %v1739_v18 = vpop.f32.mrb[24].mxu1 }
 0x6b7   : > { %v3050_v40 = vpop.f32.mrb[25].mxu1  ;;  %v1745_v58 = vsel %vm772_vm2, %v1739_v18, 0.0  ;;  %3317 = vxpose.xlu1.b32.start.end [1/1] (short) (narrow) %v3316_v34, 16 }
 0x6b8   : > { %v1742_v1 = vpop.f32.mrb[26].mxu1  ;;  %v2022_v60 = vpack.c.bf16 %v1745_v58, %v1745_v58 }
 0x6b9   : > { %v3051_v41 = vpop.f32.mrb[27].mxu1 }
 0x6be   : > { %v4537_v42 = vpop.f32.mrb[28].mxu1 }
 0x6bf   : > { %v3062_v43 = vpop.f32.mrb[29].mxu1 }
 0x6c0   : > { %v1830_v44 = vpop.f32.mrb[30].mxu1 }
 0x6c1   : > { %v3063_v45 = vpop.f32.mrb[31].mxu1  ;;  %v2859_v44 = vld [vmem:[#allocation20] ss:$0 sm:$0xff] }
 0x6c2   : > { %v1629_v45 = vmul.f32 %v4350_v24, %v738_v19 }
 0x737   : > { %v3318_v41 = vpop.trf.xlu1 }
 0x73b   : > { %v3323_v43 = vpop.trf.xlu1 }
 0x73c   : > { %v3327_v58 = vunpack.i.h.bf16 %v3323_v43 }
 0x785   : > { %v1875_v26 = vpop.f32.mrb[32].mxu0 }
 0x786   : > { %v1882_v8 = vpack.c.bf16 %v1875_v26, %v1875_v26  ;;  %v3068_v47 = vpop.f32.mrb[33].mxu0  ;;  %v4587_v26 = vmul.f32 %v2859_v44, %v1629_v45 }
 0x787   : > { %v1878_v48 = vpop.f32.mrb[34].mxu0 }
 0x788   : > { %v1887_v52 = vsel %vm974_vm3, %v1882_v8, 0  ;;  %v3069_v53 = vpop.f32.mrb[35].mxu0  ;;  %2497 = vrot.lane.b32.xlu0 %v4587_v26, %s3786_s17 }
 0x789   : > { %3071 = vmatpush3.bf16.msra.mxu1 %v1887_v52  ;;  %3077 = vmatpush3.bf16.msra.mxu0 %v1887_v52  ;;  %v1792_v52 = vsel %vm773_vm6, %v4533_v36, 0.0  ;;  %v3322_v36 = vunpack.i.h.bf16 %v3318_v41 }
 0x78a   : > { %3088 = vmatprep.subr.bf16.mxu0 %v3784_v0  ;;  %3082 = vmatprep.subr.bf16.mxu1 %v3784_v0  ;;  %v2160_v24 = vpack.c.bf16 %v1792_v52, %v1792_v52 }
 0x78c   : > { %3073 = vmatmul.mubr.msk.bf16.vlgmr.msra.gmra.mrb[32].mxu1 %vm970_vm4, %v1881_v54  ;;  %3079 = vmatmul.mubr.msk.bf16.vlgmr.msra.gmra.mrb[36].mxu0 %vm970_vm4, %v1882_v8  ;;  %v3324_v8 = vunpack.i.l.bf16 %v3323_v43 }
 0x78d   : > { %3089 = vmatpush3.bf16.msra.mxu0 %v4542_v55  ;;  %3090 = vmatprep.mubr.msk.bf16.mxu0 %vm3785_vm1, %v3784_v0 }
 0x78e   : > { %3094 = vmatprep.subr.bf16.mxu0 %v3784_v0  ;;  %3084 = vmatprep.mubr.msk.bf16.mxu1 %vm3785_vm1, %v3784_v0 }
 0x794   : > { %3091 = vmatmul.mubr.msk.bf16.vlgmr.msra.gmra.mrb[40].mxu0 %vm970_vm4, %v2022_v60  ;;  %v2426_v60 = vpack.c.bf16 %v3327_v58, %v3322_v36 }
 0x795   : > { %3095 = vmatpush3.bf16.msra.mxu0 %v4563_v59  ;;  %3096 = vmatprep.mubr.msk.bf16.mxu0 %vm3785_vm1, %v3784_v0 }
 0x796   : > { %3124 = vmatprep.subr.bf16.mxu0 %v3784_v0 }
 0x7a0   : > { %3097 = vmatmul.mubr.msk.bf16.vlgmr.msra.gmra.mrb[40].mxu0 %vm732_vm0, %v4479_v3 }
 0x7a1   : > { %3126 = vmatprep.mubr.msk.bf16.mxu0 %vm3785_vm1, %v3784_v0 }
 0x85f   : > { %v1923_v38 = vpop.f32.mrb[32].mxu1  ;;  %v1966_v62 = vpop.f32.mrb[36].mxu0 }
 0x860   : > { %v1929_v5 = vadd.f32 %v1923_v38, %v1834_v6  ;;  %v1973_v7 = vpack.c.bf16 %v1966_v62, %v1966_v62  ;;  %v3074_v22 = vpop.f32.mrb[33].mxu1  ;;  %v3080_v9 = vpop.f32.mrb[37].mxu0  ;;  %v3319_v6 = vunpack.i.l.bf16 %v3318_v41  ;;  %v1833_v62 = vsel %vm773_vm6, %v4537_v42, 0.0 }
 0x861   : > { %v1926_v61 = vpop.f32.mrb[34].mxu1  ;;  %v1969_v10 = vpop.f32.mrb[38].mxu0  ;;  %v742_v42 = vunpack.c.l.bf16 %v4392_v51 }
 0x862   : > { %v1978_v11 = vsel %vm974_vm3, %v1973_v7, 0  ;;  %v3075_v13 = vpop.f32.mrb[35].mxu1  ;;  %v3081_v15 = vpop.f32.mrb[39].mxu0  ;;  %v1972_v16 = vpack.c.bf16 %v1929_v5, %v1929_v5  ;;  %v2343_v54 = vpack.c.bf16 %v3324_v8, %v3319_v6  ;;  %v1601_v61 = vsel %vm732_vm0, %v4528_v28, 0.0 }
 0x863   : > { %3083 = vmatpush3.bf16.msra.mxu1 %v1978_v11  ;;  %v1430_v10 = vrot.slane %v4332_v20, %v760_v35  ;;  %v4627_v11 = vld [vmem:[#allocation18] ss:$0 sm:$0xff] }
 0x864   : > { %3100 = vmatprep.subr.bf16.mxu1 %v3784_v0 }
 0x866   : > { %3085 = vmatmul.mubr.msk.bf16.vlgmr.msra.gmra.mrb[36].mxu1 %vm970_vm4, %v1972_v16  ;;  %v776_v16 = vadd.s32 8, %v4367_v29 }
 0x867   : > { %3102 = vmatprep.mubr.msk.bf16.mxu1 %vm3785_vm1, %v3784_v0 }
 0x868   : > { %vm777_vm7 = vcmp.eq.s32.totalorder %v776_v16, %v4369_v30 }
 0x873   : > { %v2106_v3 = vpop.f32.mrb[40].mxu0 }
 0x874   : > { %v2113_v21 = vpack.c.bf16 %v2106_v3, %v2106_v3  ;;  %v3098_v23 = vpop.f32.mrb[41].mxu0 }
 0x875   : > { %v2109_v25 = vpop.f32.mrb[42].mxu0 }
 0x876   : > { %v2118_v27 = vsel %vm974_vm3, %v2113_v21, 0  ;;  %v3099_v31 = vpop.f32.mrb[43].mxu0 }
 0x877   : > { %3101 = vmatpush3.bf16.msra.mxu1 %v2118_v27  ;;  %v778_v27 = vsel %vm777_vm7, 1.0, %v3784_v0 }
 0x878   : > { %3106 = vmatprep.subr.bf16.mxu1 %v3784_v0  ;;  %v1432_v34 = vmul.f32 %v1430_v10, %v778_v27 }
 0x939   : > { %v2014_v37 = vpop.f32.mrb[36].mxu1 }
 0x93a   : > { %v2020_v39 = vadd.f32 %v2014_v37, %v1929_v5  ;;  %v3086_v14 = vpop.f32.mrb[37].mxu1  ;;  %v2248_v5 = vpack.c.bf16 %v1833_v62, %v1833_v62 }
 0x93b   : > { %v2017_v18 = vpop.f32.mrb[38].mxu1 }
 0x93c   : > { %v2112_v40 = vpack.c.bf16 %v2020_v39, %v2020_v39  ;;  %v3087_v1 = vpop.f32.mrb[39].mxu1  ;;  %v1436_v39 = vsel %vm732_vm0, %v1432_v34, 0.0  ;;  %v2857_v18 = vld [vmem:[#allocation17] ss:$0 sm:$0xff] }
 0x93d   : > { %v1431_v1 = vmul.f32 %v1430_v10, %v4388_v50 }
 0x93e   : > { %3103 = vmatmul.mubr.msk.bf16.vlgmr.msra.gmra.mrb[40].mxu1 %vm970_vm4, %v2112_v40  ;;  %v1637_v40 = vsel %vm732_vm0, %v4587_v26, 0.0 }
 0x93f   : > { %3108 = vmatprep.mubr.msk.bf16.mxu1 %vm3785_vm1, %v3784_v0  ;;  %v1433_v43 = vsel %vm732_vm0, %v1431_v1, 0.0 }
 0xa11   : > { %v2154_v47 = vpop.f32.mrb[40].mxu1 }
 0xa12   : > { %v2161_v48 = vpack.c.bf16 %v2154_v47, %v2154_v47  ;;  %v3104_v49 = vpop.f32.mrb[41].mxu1 }
 0xa13   : > { %v2157_v53 = vpop.f32.mrb[42].mxu1 }
 0xa14   : > { %v2166_v17 = vsel %vm974_vm3, %v2161_v48, 0  ;;  %v3105_v19 = vpop.f32.mrb[43].mxu1 }
 0xa15   : > { %3107 = vmatpush3.bf16.msra.mxu1 %v2166_v17  ;;  %3125 = vmatpush3.bf16.msra.mxu0 %v2166_v17 }
 0xa16   : > { %3130 = vmatprep.subr.bf16.mxu0 %v3784_v0  ;;  %3112 = vmatprep.subr.bf16.mxu1 %v3784_v0 }
 0xa18   : > { %3109 = vmatmul.mubr.msk.bf16.vlgmr.msra.gmra.mrb[44].mxu1 %vm970_vm4, %v2160_v24  ;;  %3127 = vmatmul.mubr.msk.bf16.vlgmr.msra.gmra.mrb[44].mxu0 %vm970_vm4, %v2343_v54 }
 0xa19   : > { %3131 = vmatpush3.bf16.msra.mxu0 %v4542_v55  ;;  %3113 = vmatpush3.bf16.msra.mxu1 %v4563_v59  ;;  %v2498_v59 = vpop.permute.xlu0 %2497 }
 0xa1a   : > { %3114 = vmatprep.mubr.msk.bf16.mxu1 %vm3785_vm1, %v3784_v0  ;;  %3118 = vmatprep.subr.bf16.mxu1 %v3784_v0  ;;  %v2500_v38 = vsel %vm732_vm0, %v2498_v59, 0.0 }
 0xa1b   : > { %3132 = vmatprep.mubr.msk.bf16.mxu0 %vm3785_vm1, %v3784_v0  ;;  %2501 = vadd.xlane.f32.xlu0 %v2500_v38 }
 0xa24   : > { %3115 = vmatmul.mubr.msk.bf16.vlgmr.msra.gmra.mrb[44].mxu1 %vm732_vm0, %v4486_v4  ;;  %3133 = vmatmul.mubr.msk.bf16.vlgmr.msra.gmra.mrb[44].mxu0 %vm970_vm4, %v2426_v60 }
 0xa25   : > { %3119 = vmatpush3.bf16.msra.mxu1 %v4542_v55  ;;  %3120 = vmatprep.mubr.msk.bf16.mxu1 %vm3785_vm1, %v3784_v0  ;;  %v747_v0 = vld [vmem:[%s623_s22] sm:$0xf]  ;;  %s3671_s22 = scalar_lea.vmem %s3670_s20, 128 }
 0xa26   : > { %p3673_p0 = scmp.lt.s32.totalorder %s3671_s22, %s3665_s1 }
 0xa28   : > { %p3674_p7 = por %p3673_p0, %p3672_p4 }
 0xa2a   : > { %p3675_p10 = pnand %p3674_p7, %p3668_p11 }
 0xa30   : > { %3121 = vmatmul.mubr.msk.bf16.vlgmr.msra.gmra.mrb[44].mxu1 %vm970_vm4, %v2248_v5 }
 0xaa8   : > { %v2502_v13 = vpop.xlane.xlu0 %2501 }
 0xaa9   : > { %v2503_v15 = vmul.f32 %v2502_v13, %v742_v42 }
 0xaf7   : > { %v2464_v45 = vpop.f32.mrb[44].mxu0 }
 0xaf8   : > { %v3134_v6 = vpop.f32.mrb[45].mxu0 }
 0xaf9   : > { %v2467_v8 = vpop.f32.mrb[46].mxu0 }
 0xafa   : > { %v3135_v47 = vpop.f32.mrb[47].mxu0 }
 0xb03   : > { %v2286_v4 = vpop.f32.mrb[44].mxu1 }
 0xb04   : > { %v3122_v7 = vpop.f32.mrb[45].mxu1  ;;  %v2475_v22 = vsel %vm732_vm0, %v2286_v4, 0.0 }
 0xb05   : > { %2476 = vadd.xlane.f32.xlu1 %v2475_v22  ;;  %v2289_v55 = vpop.f32.mrb[46].mxu1 }
 0xb06   : > { %v3123_v9 = vpop.f32.mrb[47].mxu1 }
 0xb09   : > { %1602 = vadd.xlane.f32.xlu1 %v1601_v61 }
 0xb1a   : > { %2294 = vrot.lane.b32.xlu1 %v1430_v10, %s3786_s17 }
 0xb1e   : > { %2492 = vrot.lane.b32.xlu1 %v4627_v11, %s3786_s17 }
 0xb22   : > { %2505 = vrot.lane.b32.xlu1 %v2503_v15, %s3786_s17 }
 0xb92   : > { %v2477_v3 = vpop.xlane.xlu1 %2476 }
 0xb93   : > { %v2478_v21 = vmul.f32 0.0625, %v2477_v3 }
 0xb95   : > { %v2479_v20 = vsub.f32 %v2286_v4, %v2478_v21 }
 0xb96   : > { %v1603_v35 = vpop.xlane.xlu1 %1602 }
 0xb97   : > { %v1605_v23 = vmul.f32 0.0625, %v1603_v35  ;;  %v2480_v25 = vmul.f32 %v2479_v20, %v2479_v20 }
 0xb99   : > { %v1606_v31 = vsub.f32 %v4528_v28, %v1605_v23  ;;  %v2481_v32 = vsel %vm732_vm0, %v2480_v25, 0.0  ;;  %v748_v28 = vunpack.c.l.bf16 %v747_v0 }
 0xb9a   : > { %2482 = vadd.xlane.f32.xlu0 %v2481_v32  ;;  %v2295_v37 = vpop.permute.xlu1 %2294 }
 0xb9b   : > { %v1607_v33 = vmul.f32 %v1606_v31, %v1606_v31  ;;  %v2298_v30 = vmul.f32 %v2295_v37, %v778_v27  ;;  %v2297_v41 = vmul.f32 %v2295_v37, %v4388_v50 }
 0xb9d   : > { %v1608_v29 = vsel %vm732_vm0, %v1607_v33, 0.0  ;;  %v2302_v14 = vsel %vm732_vm0, %v2298_v30, 0.0  ;;  %v2299_v44 = vsel %vm732_vm0, %v2297_v41, 0.0 }
 0xb9e   : > { %1609 = vadd.xlane.f32.xlu1 %v1608_v29  ;;  %v2493_v48 = vpop.permute.xlu1 %2492 }
 0xba2   : > { %1437 = vadd.xlane.f32.xlu1 %v1436_v39  ;;  %v2506_v49 = vpop.permute.xlu1 %2505 }
 0xba6   : > { %2303 = vadd.xlane.f32.xlu1 %v2302_v14 }
 0xbb0   : > { %2488 = vrot.lane.b32.xlu0 %v2857_v18, %s3786_s17 }
 0xbb4   : > { %2510 = vrot.lane.b32.xlu0 %v748_v28, %s3786_s17 }
 0xbd3   : > { %1638 = vadd.xlane.f32.xlu0 %v1637_v40 }
 0xbd7   : > { %1434 = vadd.xlane.f32.xlu0 %v1433_v43 }
 0xbdb   : > { %2300 = vadd.xlane.f32.xlu0 %v2299_v44 }
 0xc27   : > { %v2483_v52 = vpop.xlane.xlu0 %2482 }
 0xc28   : > { %v2484_v53 = vmul.f32 0.0625, %v2483_v52 }
 0xc2a   : > { %v2485_v26 = vadd.f32 0.00064, %v2484_v53 }
 0xc2b   : > { %v1610_v17 = vpop.xlane.xlu1 %1609  ;;  %v2489_v60 = vpop.permute.xlu0 %2488 }
 0xc2c   : > { %3337 = vrsqrt.f32 %v2485_v26 }
 0xc2f   : > { %v1438_v54 = vpop.xlane.xlu1 %1437  ;;  %v2511_v4 = vpop.permute.xlu0 %2510 }
 0xc30   : > { %v1440_v50 = vmul.f32 %v1438_v54, %v4414_v2  ;;  %v1611_v2 = vmul.f32 0.0625, %v1610_v17 }
 0xc32   : > { %v3137_v19 = vadd.f32 %v4523_v12, %v1440_v50  ;;  %v1612_v12 = vadd.f32 0.00064, %v1611_v2 }
 0xc33   : > { %v2304_v24 = vpop.xlane.xlu1 %2303 }
 0xc34   : > { %1600 = vst.msk [vmem:[#allocation2 + $0x8] sm:$0xff] %vm732_vm0, %v3137_v19  ;;  %v2306_v36 = vmul.f32 %v2304_v24, %v4554_v57  ;;  %3339 = vrsqrt.f32 %v1612_v12 }
 0xc36   : > { %v3338_v58 = vpop.eup %3337  ;;  %v3139_v59 = vadd.f32 %v2467_v8, %v2306_v36 }
 0xc37   : > { %v2487_v38 = vmul.f32 %v3338_v58, %v2479_v20 }
 0xc38   : > { %2474 = vst.msk [vmem:[#allocation2 + $0x18] sm:$0xff] %vm732_vm0, %v3139_v59 }
 0xc39   : > { %v2491_v62 = vmul.f32 %v2489_v60, %v2487_v38 }
 0xc3b   : > { %v2495_v5 = vadd.f32 %v2493_v48, %v2491_v62 }
 0xc3d   : > { %v2508_v7 = vadd.f32 %v2506_v49, %v2495_v5 }
 0xc3e   : > { %v3340_v55 = vpop.eup %3339 }
 0xc3f   : > { %v2513_v22 = vmul.f32 %v2511_v4, %v2508_v7  ;;  %v1614_v9 = vmul.f32 %v3340_v55, %v1606_v31 }
 0xc41   : > { %2515 = vrot.lane.b32.xlu0 %v2513_v22, %s3787_s3  ;;  %v1621_v57 = vmul.f32 %v2857_v18, %v1614_v9 }
 0xc43   : > { %v1628_v10 = vadd.f32 %v4627_v11, %v1621_v57 }
 0xc60   : > { %v1639_v61 = vpop.xlane.xlu0 %1638 }
 0xc61   : > { %v1640_v13 = vmul.f32 %v1639_v61, %v742_v42 }
 0xc63   : > { %v1641_v15 = vadd.f32 %v1640_v13, %v1628_v10 }
 0xc64   : > { %v1435_v16 = vpop.xlane.xlu0 %1434 }
 0xc65   : > { %v1439_v3 = vmul.f32 %v1435_v16, %v4412_v63  ;;  %v1642_v11 = vmul.f32 %v1641_v15, %v748_v28 }
 0xc67   : > { %v3136_v21 = vadd.f32 %v4521_v46, %v1439_v3 }
 0xc68   : > { %v2301_v20 = vpop.xlane.xlu0 %2300 }
 0xc69   : > { %1599 = vst.msk [vmem:[#allocation2] sm:$0xff] %vm732_vm0, %v3136_v21  ;;  %v2305_v35 = vmul.f32 %v2301_v20, %v4552_v56 }
 0xc6b   : > { %v3138_v23 = vadd.f32 %v2464_v45, %v2305_v35 }
 0xc6d   : > { %2473 = vst.msk [vmem:[#allocation2 + $0x10] sm:$0xff] %vm732_vm0, %v3138_v23 }
 0xcb3   : > { %v2516_v51 = vpop.permute.xlu0 %2515 }
 0xcb4   : > { %v2518_v42 = vsel %vm732_vm0, %v1642_v11, %v2516_v51 }
 0xcb5   : > { %v2519_v63 = vpack.c.bf16 %v2518_v42, %v2518_v42 }
 0xcb7   : > { %2521 = vst.msk [vmem:[%s726_s14] sm:$0xf] %vm2520_vm8, %v2519_v63 }
 0xcb8   : > { %3678 = shalt.err (!%p3675_p10)
}
 0xcb9   : > { %s3679_s24 = scalar_lea.hbm %s4671_s11, 64  ;;  %s3683_s25 = scalar_lea.hbm %s4809_s29, 128 }
 0xcba   : > { %p3680_p5 = scmp.ne.s32.totalorder %s4671_s11, %s3679_s24  ;;  %p3684_p1 = scmp.lt.u32.totalorder %s4671_s11, %s4809_s29 }
 0xcbb   : > { %p3685_p13 = scmp.lt.u32.totalorder %s3683_s25, %s3679_s24  ;;  %p3687_p3 = scmp.lt.u32.totalorder %s3679_s24, %s4671_s11 }
 0xcbc   : > { %p3681_p9 = pnand %p3680_p5, %p4810_p6 }
 0xcbd   : > { %p3686_p2 = por %p3685_p13, %p3684_p1 }
 0xcbe   : > { %p3682_p12 = pneg %p3681_p9 }
 0xcbf   : > { %p3688_p8 = por %p3687_p3, %p3686_p2 }
 0xcc1   : > { %p3689_p11 = pnand %p3688_p8, %p3682_p12 }
 0xcc3   : > { %3692 = shalt.err (!%p3689_p11)
}
 0xcc4   : > { %3200 = dma.vmem_to_hbm [thread:$0]  (%p4810_p6), %s4673_s30, 64, %s4671_s11, %s2523_s8  }
 0xcc5 PF: > { %s4811_s3 = sld [smem:[#allocation30_spill]]  ;;  %s4812_s16 = sld [smem:[#allocation37_spill]] }
 0xcc6   : > { %s4813_s18 = sld [smem:[#allocation33_spill]] }
 0xccb   : > { %s2549_s14 = sand.u32 1, %s4811_s3   ;;  %p4814_p4 = scmp.ne.s32.totalorder %s4812_s16, 0 }
 0xccc   : > { %p4815_p0 = scmp.ge.s32.totalorder %s4813_s18, 2  ;;  %s2550_s27 = scalar_lea.sflag [#allocation5], %s2549_s14 }
 0xcce   : > { %p3238_p7 = pnand %p4815_p0, %p4814_p4 }
 0xcd0   : > { %3746 = dma.done.wait (!%p3238_p7), %s2550_s27, 64  }
 0xcd1   : > { %3748 = vsyncadd (!%p3238_p7), %s2550_s27, 4294967232  ;;  %s40_s22 = sadd.s32 1, %s4813_s18   ;;  %s4816_s17 = sld [smem:[#allocation31_spill]] }
 0xcd2   : > { %p37_p10 = scmp.ge.s32.totalorder %s40_s22, 4   ;;  %s4817_s23 = sld [smem:[#allocation38_spill]] }
 0xcd3   : > { %s4818_s18 = smov %s3759_s19  ;;  %s4819_s19 = smov %s4010_s9 }
 0xcd4   : > { %s4820_s20 = smov %s3767_s21  ;;  %39 = sbr.rel (!%p37_p10) target bundleno = 21 (0x15), region = 211 }
 0xcd8   : > { %s4821_s21 = smov %s4817_s23 }
 0xcdb   :  { %2555 = vsyncpa [#allocation4], 1 }
 0xcdc   :  { %2557 = vsyncpa [#allocation4 + $0x1], 1 }
 0xcdd   :  { %2558 = vsyncpa [#allocation7], 1 }
 0xcde   :  { %2560 = vsyncpa [#allocation7 + $0x1], 1 }
 0xcdf   :  { %2561 = vsyncpa [#allocation10], 1 }
 0xce0   :  { %2563 = vsyncpa [#allocation10 + $0x1], 1 }
 0xce1   :  { %2564 = vsyncpa [#allocation13], 1 }
 0xce2   :  { %2566 = vsyncpa [#allocation13 + $0x1], 1 }
 0xce3   :  { %2567 = vsyncpa [#allocation16], 1 }
 0xce4   :  { %2569 = vsyncpa [#allocation16 + $0x1], 1 }
 0xce5   :  { %2570 = vsyncpa [#allocation19], 1 }
 0xce6   :  { %2571 = vsyncpa [#allocation5], 1 }
 0xce7   :  { %2573 = vsyncpa [#allocation5 + $0x1], 1 }

</bundles_post_ra>
